<compile_context>
chip_gen: v7x
topology: tpu7x:2x2x1
jax: 0.10.0
libtpu: 0.0.40
codegen_flags: <defaults>
</compile_context>

<pallas_src>
import functools
import numpy as np
import jax
import jax.numpy as jnp
from jax.experimental import pallas as pl
from jax.experimental.pallas import tpu as pltpu

# ---------------- small config consistent with the module -------------------
IMG_SIZE    = 16
PATCH_SIZE  = 4
IN_CHANS    = 3
EMBED_DIM   = 32
DEPTH       = 2
NUM_HEADS   = 4
MLP_RATIO   = 4.0
LN_EPS      = 1e-5                      # nn.LayerNorm default eps
NUM_PATCHES = (IMG_SIZE // PATCH_SIZE) ** 2
HEAD_DIM    = EMBED_DIM // NUM_HEADS
HIDDEN_DIM  = int(EMBED_DIM * MLP_RATIO)
PATCH_DIM   = IN_CHANS * PATCH_SIZE * PATCH_SIZE


# --------------------------- in-kernel math helpers ---------------------------
def _ln(x, g, b):
    """LayerNorm over last dim; g/b are (1, D)."""
    mu = jnp.mean(x, axis=-1, keepdims=True)
    xc = x - mu
    var = jnp.mean(xc * xc, axis=-1, keepdims=True)
    return xc * jax.lax.rsqrt(var + LN_EPS) * g + b


def _erf(z):
    # Abramowitz & Stegun 7.1.26 polynomial, |abs err| <= 1.5e-7 (f32-exact).
    # Only exp + VPU ops (+ one EUP reciprocal) -> guaranteed Mosaic lowering.
    a1, a2, a3, a4, a5 = 0.254829592, -0.284496736, 1.421413741, -1.453152027, 1.061405429
    pp = 0.3275911
    sgn = jnp.where(z < 0.0, -1.0, 1.0)
    az = jnp.abs(z)
    t = pl.reciprocal(1.0 + pp * az, approx=False)     # divide on EUP slot
    poly = ((((a5 * t + a4) * t + a3) * t + a2) * t + a1) * t
    return sgn * (1.0 - poly * jnp.exp(-az * az))


def _gelu(x):
    """Exact GELU (nn.GELU default, erf-based)."""
    return 0.5 * x * (1.0 + _erf(x * 0.7071067811865476))


# ------------------------------ fused encoder kernel -------------------------
def _encoder_kernel(tok_ref, pw_ref,
                    ln1_g_ref, ln1_b_ref, qkv_w_ref, qkv_b_ref, attn_b_ref,
                    ln2_g_ref, ln2_b_ref, fc1_w_ref, fc1_b_ref,
                    fc2_w_ref, fc2_b_ref, norm_g_ref, norm_b_ref,
                    o_ref, *, b_blk, n_tok):
    f32 = jnp.float32
    D, Dh, H, P = EMBED_DIM, HEAD_DIM, NUM_HEADS, PATCH_DIM

    blk = tok_ref[0]                                    # (M, P + D), M = b_blk * n_tok
    ptok = blk[:, :P]                                   # patch pixels (cls row = zeros)
    add = blk[:, P:]                                    # pos (+cls_token +patch bias)

    # patch embed over ALL tokens of the block in one tall matmul
    x = jnp.dot(ptok, pw_ref[...], preferred_element_type=f32) + add     # (M, D)

    for l in range(DEPTH):                              # static unroll, DEPTH=2
        # ------------------ attention branch ------------------
        h = _ln(x, ln1_g_ref[l], ln1_b_ref[l])
        # columns: [0:D]=q (pre-scaled), [D:2D]=k, [2D+hd*D : 2D+(hd+1)*D]=v@Wproj_h
        qkv = jnp.dot(h, qkv_w_ref[l], preferred_element_type=f32) + qkv_b_ref[l]
        y_parts = []
        for b in range(b_blk):                          # attention stays per-sample
            r0 = b * n_tok
            q_b = qkv[r0:r0 + n_tok, 0:D]
            k_b = qkv[r0:r0 + n_tok, D:2 * D]
            y_b = jnp.zeros((n_tok, D), f32)
            for hd in range(H):
                q_h = q_b[:, hd * Dh:(hd + 1) * Dh]
                k_h = k_b[:, hd * Dh:(hd + 1) * Dh]
                vp_h = qkv[r0:r0 + n_tok, 2 * D + hd * D:2 * D + (hd + 1) * D]
                # NT matmul: contract dim 1 of both -> no XLU transpose of k
                s = jax.lax.dot_general(q_h, k_h, (((1,), (1,)), ((), ())),
                                        preferred_element_type=f32)       # (n_tok, n_tok)
                s = s - jnp.max(s, axis=-1, keepdims=True)
                p = jnp.exp(s)
                p = p * pl.reciprocal(jnp.sum(p, axis=-1, keepdims=True), approx=False)
                # folded value+output projection: output is already D lanes wide
                y_b = y_b + jnp.dot(p, vp_h, preferred_element_type=f32)
            y_parts.append(y_b)
        y = y_parts[0] if b_blk == 1 else jnp.concatenate(y_parts, axis=0)
        x = x + y + attn_b_ref[l]
        # --------------------- MLP branch ----------------------
        h = _ln(x, ln2_g_ref[l], ln2_b_ref[l])
        h = jnp.dot(h, fc1_w_ref[l], preferred_element_type=f32) + fc1_b_ref[l]
        h = _gelu(h)
        x = x + jnp.dot(h, fc2_w_ref[l], preferred_element_type=f32) + fc2_b_ref[l]

    o_ref[0] = _ln(x, norm_g_ref[...], norm_b_ref[...]).astype(o_ref.dtype)


def _full_spec(a):
    r = a.ndim
    return pl.BlockSpec(a.shape, lambda i, _r=r: (0,) * _r)


def _encoder_pallas(tok, params, n_tok):
    """tok: (B_eff, n_tok, PATCH_DIM + EMBED_DIM) pixel||additive tokens."""
    B_eff = tok.shape[0]
    C = tok.shape[-1]
    D = EMBED_DIM
    # 2 parallel batch halves when possible (keeps both v7x TCs busy); otherwise
    # a single step (single-TC v5e/v6e: extra steps are pure per-step overhead).
    n_blocks = 2 if (B_eff >= 2 and B_eff % 2 == 0) else 1
    b_blk = B_eff // n_blocks
    M = b_blk * n_tok
    tok_blocked = tok.reshape(n_blocks, M, C)           # free layout reshape in XLA

    blk = params["blocks"]
    weights = [params["patch_w"],
               blk["ln1_g"], blk["ln1_b"], blk["qkv_w"], blk["qkv_b"], blk["attn_b"],
               blk["ln2_g"], blk["ln2_b"], blk["fc1_w"], blk["fc1_b"],
               blk["fc2_w"], blk["fc2_b"],
               params["norm_g"], params["norm_b"]]
    in_specs = ([pl.BlockSpec((1, M, C), lambda i: (i, 0, 0))]
                + [_full_spec(w) for w in weights])
    kern = functools.partial(_encoder_kernel, b_blk=b_blk, n_tok=n_tok)
    out = pl.pallas_call(
        kern,
        out_shape=jax.ShapeDtypeStruct((n_blocks, M, D), jnp.float32),
        grid=(n_blocks,),
        in_specs=in_specs,
        out_specs=pl.BlockSpec((1, M, D), lambda i: (i, 0, 0)),
        compiler_params=pltpu.CompilerParams(dimension_semantics=("parallel",)),
    )(tok_blocked, *weights)
    return out.reshape(B_eff, n_tok, D)


# ----------------------- deterministic parameter setup -----------------------
def _sincos_1d(embed_dim, pos):
    omega = np.arange(embed_dim // 2, dtype=np.float64) / (embed_dim / 2.0)
    omega = 1.0 / 10000 ** omega
    out = np.einsum("m,d->md", pos.reshape(-1).astype(np.float64), omega)
    return np.concatenate([np.sin(out), np.cos(out)], axis=1)


def get_2d_sincos_pos_embed(embed_dim, grid_size, cls_token=False):
    grid_h = np.arange(grid_size, dtype=np.float64)
    grid_w = np.arange(grid_size, dtype=np.float64)
    grid = np.meshgrid(grid_w, grid_h)
    grid = np.stack(grid, axis=0).reshape([2, 1, grid_size, grid_size])
    emb_h = _sincos_1d(embed_dim // 2, grid[0])
    emb_w = _sincos_1d(embed_dim // 2, grid[1])
    emb = np.concatenate([emb_h, emb_w], axis=1)
    if cls_token:
        emb = np.concatenate([np.zeros([1, embed_dim]), emb], axis=0)
    return emb


def xavier_uniform(key, fan_in, fan_out, shape):
    bound = float(np.sqrt(6.0 / (fan_in + fan_out)))
    return jax.random.uniform(key, shape, jnp.float32, -bound, bound)


def init_params(key):
    D, Dh, H = EMBED_DIM, HEAD_DIM, NUM_HEADS
    keys = jax.random.split(key, 2 + DEPTH)
    params = {}
    # patch_embed.proj (Conv2d k=p, s=p) == linear over flattened (C,p,p) patches
    w = xavier_uniform(keys[0], PATCH_DIM, D, (D, PATCH_DIM))
    params["patch_w"] = jnp.asarray(w).T                        # (patch_dim, D)
    params["patch_b"] = jnp.zeros((D,), jnp.float32)
    params["cls_token"] = 0.02 * jax.random.normal(keys[1], (1, 1, D), jnp.float32)
    pos = get_2d_sincos_pos_embed(D, int(NUM_PATCHES ** 0.5), cls_token=True)
    params["pos_embed"] = jnp.asarray(pos, jnp.float32)[None]   # (1, N+1, D)

    scale = HEAD_DIM ** -0.5                                    # folded into q

    acc = {k: [] for k in ["ln1_g", "ln1_b", "qkv_w", "qkv_b", "attn_b",
                           "ln2_g", "ln2_b", "fc1_w", "fc1_b", "fc2_w", "fc2_b"]}
    for i in range(DEPTH):
        bk = jax.random.split(keys[2 + i], 4)
        qkv_w = xavier_uniform(bk[0], D, 3 * D, (D, 3 * D))
        qkv_b = jnp.zeros((3 * D,), jnp.float32)
        proj_w = xavier_uniform(bk[1], D, D, (D, D))
        proj_b = jnp.zeros((D,), jnp.float32)

        # --- fold attention scale into q, and Wv @ Wproj per head (weight prep) ---
        Wq = qkv_w[:, :D] * scale
        Wk = qkv_w[:, D:2 * D]
        Wv = qkv_w[:, 2 * D:]
        bq = qkv_b[:D] * scale
        bk_ = qkv_b[D:2 * D]
        bv = qkv_b[2 * D:]
        vproj = [Wv[:, h * Dh:(h + 1) * Dh] @ proj_w[h * Dh:(h + 1) * Dh, :]
                 for h in range(H)]                              # each (D, D)
        qkv_w_fold = jnp.concatenate([Wq, Wk] + vproj, axis=1)   # (D, 2D + H*D)
        qkv_b_fold = jnp.concatenate(
            [bq, bk_, jnp.zeros((H * D,), jnp.float32)]).reshape(1, 2 * D + H * D)
        # v bias routed through proj (softmax rows sum to 1) + proj bias
        attn_b = proj_b + sum(bv[h * Dh:(h + 1) * Dh] @ proj_w[h * Dh:(h + 1) * Dh, :]
                              for h in range(H))

        acc["ln1_g"].append(jnp.ones((1, D), jnp.float32))
        acc["ln1_b"].append(jnp.zeros((1, D), jnp.float32))
        acc["qkv_w"].append(qkv_w_fold)
        acc["qkv_b"].append(qkv_b_fold)
        acc["attn_b"].append(attn_b.reshape(1, D))
        acc["ln2_g"].append(jnp.ones((1, D), jnp.float32))
        acc["ln2_b"].append(jnp.zeros((1, D), jnp.float32))
        acc["fc1_w"].append(xavier_uniform(bk[2], D, HIDDEN_DIM, (D, HIDDEN_DIM)))
        acc["fc1_b"].append(jnp.zeros((1, HIDDEN_DIM), jnp.float32))
        acc["fc2_w"].append(xavier_uniform(bk[3], HIDDEN_DIM, D, (HIDDEN_DIM, D)))
        acc["fc2_b"].append(jnp.zeros((1, D), jnp.float32))
    params["blocks"] = {k: jnp.stack(v, axis=0) for k, v in acc.items()}   # (DEPTH, ...)
    params["norm_g"] = jnp.ones((1, D), jnp.float32)
    params["norm_b"] = jnp.zeros((1, D), jnp.float32)
    return params


# ------------------------------- model forward --------------------------------
@jax.jit
def _forward_impl(params, imgs, keep):
    """keep: (B_eff, Nk) int32 flat token indices into the (B*L) patch grid."""
    B, C, H, W = imgs.shape
    ps = PATCH_SIZE
    L = (H // ps) * (W // ps)
    D = EMBED_DIM
    B_eff, Nk = keep.shape
    P = C * ps * ps

    # conv-as-linear patch extraction (layout only): (B*L, C*ps*ps)
    patches = imgs.reshape(B, C, H // ps, ps, W // ps, ps)
    patches = patches.transpose(0, 2, 4, 1, 3, 5).reshape(B * L, P)
    pos_pat = jnp.broadcast_to(params["pos_embed"][:, 1:, :], (B, L, D)).reshape(B * L, D)

    kf = keep.reshape(-1)
    ptok = jnp.take(patches, kf, axis=0).reshape(B_eff, Nk, P)
    posk = jnp.take(pos_pat, kf, axis=0).reshape(B_eff, Nk, D)

    # token 0 = cls token: zero pixels + additive row (cls_token + pos[0]);
    # patch tokens get pos + patch bias as their additive term.
    ptok_full = jnp.concatenate([jnp.zeros((B_eff, 1, P), jnp.float32), ptok], axis=1)
    cls_row = params["cls_token"][0] + params["pos_embed"][:, 0, :]          # (1, D)
    add_full = jnp.concatenate(
        [jnp.broadcast_to(cls_row, (B_eff, 1, D)),
         posk + params["patch_b"].reshape(1, 1, D)], axis=1)
    # one fused input: pixel tokens || additive tokens  -> single DMA per step
    tok = jnp.concatenate([ptok_full, add_full], axis=-1)       # (B_eff, Nk+1, P+D)
    return _encoder_pallas(tok, params, Nk + 1)


def forward(params, imgs, mask=None, f2d=False):
    """Mirrors Masked2DEncoderViT.forward: f2d=True -> forward_2D, else forward_encoder."""
    B = int(imgs.shape[0])
    if f2d:
        keep = np.arange(B * NUM_PATCHES, dtype=np.int32).reshape(B, NUM_PATCHES)
    else:
        # mask is a static numpy bool array (True = drop). Mirrors the reference
        # logic, including its B=0.75*B special case when sample 0 has no masked tokens.
        selector = ~np.asarray(mask, dtype=bool).reshape(B, -1)
        B_eff = int(B * 0.75) if int((~selector[0]).sum()) == 0 else B
        kept = np.nonzero(selector.reshape(-1))[0].astype(np.int32)
        assert kept.size % B_eff == 0, "kept token count must split evenly across batch"
        keep = kept.reshape(B_eff, -1)
    return _forward_impl(params, imgs, jnp.asarray(keep))


if __name__ == "__main__":
    key = jax.random.PRNGKey(0)
    pkey, dkey = jax.random.split(key)
    params = init_params(pkey)
    imgs = jax.random.normal(dkey, (2, IN_CHANS, IMG_SIZE, IMG_SIZE), jnp.float32)
    # deterministic mask: drop every 4th patch in each sample (True = masked)
    mask = (np.tile(np.arange(NUM_PATCHES)[None, :], (2, 1)) % 4) == 0

    out_masked = forward(params, imgs, mask=mask, f2d=False)   # forward_encoder path
    out_full = forward(params, imgs, f2d=True)                 # forward_2D path
    jax.block_until_ready(out_masked)
    jax.block_until_ready(out_full)

    assert out_masked.shape == (2, 1 + NUM_PATCHES - NUM_PATCHES // 4, EMBED_DIM)
    assert out_full.shape == (2, 1 + NUM_PATCHES, EMBED_DIM)
    assert out_masked.dtype == jnp.float32 and out_full.dtype == jnp.float32
    assert bool(jnp.all(jnp.isfinite(out_masked))) and bool(jnp.all(jnp.isfinite(out_full)))
    print("KERNEL_OK")
</pallas_src>

<mosaic_0001>
module attributes {stable_mosaic.version = 11 : i64} {
  func.func @_encoder_kernel(%arg0: i32, %arg1: memref<1x13x80xf32, #tpu.memory_space<vmem>>, %arg2: memref<48x32xf32, #tpu.memory_space<vmem>>, %arg3: memref<2x1x32xf32, #tpu.memory_space<vmem>>, %arg4: memref<2x1x32xf32, #tpu.memory_space<vmem>>, %arg5: memref<2x32x192xf32, #tpu.memory_space<vmem>>, %arg6: memref<2x1x192xf32, #tpu.memory_space<vmem>>, %arg7: memref<2x1x32xf32, #tpu.memory_space<vmem>>, %arg8: memref<2x1x32xf32, #tpu.memory_space<vmem>>, %arg9: memref<2x1x32xf32, #tpu.memory_space<vmem>>, %arg10: memref<2x32x128xf32, #tpu.memory_space<vmem>>, %arg11: memref<2x1x128xf32, #tpu.memory_space<vmem>>, %arg12: memref<2x128x32xf32, #tpu.memory_space<vmem>>, %arg13: memref<2x1x32xf32, #tpu.memory_space<vmem>>, %arg14: memref<1x32xf32, #tpu.memory_space<vmem>>, %arg15: memref<1x32xf32, #tpu.memory_space<vmem>>, %arg16: memref<1x13x32xf32, #tpu.memory_space<vmem>>) attributes {dimension_semantics = [#tpu.dimension_semantics<parallel>], iteration_bounds = array<i64: 2>, scalar_prefetch = 0 : i64, scratch_operands = 0 : i64, tpu.core_type = #tpu.core_type<tc>, window_params = [{transform_indices = @transform_0, window_bounds = array<i64: 1, 13, 80>}, {pipeline_mode = #tpu.pipeline_mode<synchronous>, transform_indices = @transform_1, window_bounds = array<i64: 48, 32>}, {pipeline_mode = #tpu.pipeline_mode<synchronous>, transform_indices = @transform_2, window_bounds = array<i64: 2, 1, 32>}, {pipeline_mode = #tpu.pipeline_mode<synchronous>, transform_indices = @transform_3, window_bounds = array<i64: 2, 1, 32>}, {pipeline_mode = #tpu.pipeline_mode<synchronous>, transform_indices = @transform_4, window_bounds = array<i64: 2, 32, 192>}, {pipeline_mode = #tpu.pipeline_mode<synchronous>, transform_indices = @transform_5, window_bounds = array<i64: 2, 1, 192>}, {pipeline_mode = #tpu.pipeline_mode<synchronous>, transform_indices = @transform_6, window_bounds = array<i64: 2, 1, 32>}, {pipeline_mode = #tpu.pipeline_mode<synchronous>, transform_indices = @transform_7, window_bounds = array<i64: 2, 1, 32>}, {pipeline_mode = #tpu.pipeline_mode<synchronous>, transform_indices = @transform_8, window_bounds = array<i64: 2, 1, 32>}, {pipeline_mode = #tpu.pipeline_mode<synchronous>, transform_indices = @transform_9, window_bounds = array<i64: 2, 32, 128>}, {pipeline_mode = #tpu.pipeline_mode<synchronous>, transform_indices = @transform_10, window_bounds = array<i64: 2, 1, 128>}, {pipeline_mode = #tpu.pipeline_mode<synchronous>, transform_indices = @transform_11, window_bounds = array<i64: 2, 128, 32>}, {pipeline_mode = #tpu.pipeline_mode<synchronous>, transform_indices = @transform_12, window_bounds = array<i64: 2, 1, 32>}, {pipeline_mode = #tpu.pipeline_mode<synchronous>, transform_indices = @transform_13, window_bounds = array<i64: 1, 32>}, {pipeline_mode = #tpu.pipeline_mode<synchronous>, transform_indices = @transform_14, window_bounds = array<i64: 1, 32>}, {transform_indices = @transform_15, window_bounds = array<i64: 1, 13, 32>}]} {
    %c0 = arith.constant 0 : index
    %c0_0 = arith.constant 0 : index
    %c0_1 = arith.constant 0 : index
    %0 = vector.load %arg1[%c0, %c0_0, %c0_1] : memref<1x13x80xf32, #tpu.memory_space<vmem>>, vector<1x13x80xf32>
    %1 = vector.shape_cast %0 : vector<1x13x80xf32> to vector<13x80xf32>
    %2 = vector.extract_strided_slice %1 {offsets = [0, 0], sizes = [13, 48], strides = [1, 1]} : vector<13x80xf32> to vector<13x48xf32>
    %3 = vector.extract_strided_slice %1 {offsets = [0, 48], sizes = [13, 32], strides = [1, 1]} : vector<13x80xf32> to vector<13x32xf32>
    %c0_2 = arith.constant 0 : index
    %c0_3 = arith.constant 0 : index
    %4 = vector.load %arg2[%c0_2, %c0_3] : memref<48x32xf32, #tpu.memory_space<vmem>>, vector<48x32xf32>
    %cst = arith.constant dense<0.000000e+00> : vector<13x32xf32>
    %5 = tpu.matmul %2, %4, %cst {dimension_numbers = #tpu.dot_dimension_numbers<[1], [0], [0], [1], [0, 0, 1, 1], [], []>} : vector<13x48xf32>, vector<48x32xf32>, vector<13x32xf32> -> vector<13x32xf32>
    %6 = arith.addf %5, %3 : vector<13x32xf32>
    %c0_4 = arith.constant 0 : index
    %c0_5 = arith.constant 0 : index
    %c0_6 = arith.constant 0 : index
    %7 = vector.load %arg3[%c0_4, %c0_5, %c0_6] : memref<2x1x32xf32, #tpu.memory_space<vmem>>, vector<1x1x32xf32>
    %8 = vector.shape_cast %7 : vector<1x1x32xf32> to vector<1x32xf32>
    %c0_7 = arith.constant 0 : index
    %c0_8 = arith.constant 0 : index
    %c0_9 = arith.constant 0 : index
    %9 = vector.load %arg4[%c0_7, %c0_8, %c0_9] : memref<2x1x32xf32, #tpu.memory_space<vmem>>, vector<1x1x32xf32>
    %10 = vector.shape_cast %9 : vector<1x1x32xf32> to vector<1x32xf32>
    %cst_10 = arith.constant dense<0.000000e+00> : vector<13xf32>
    %11 = vector.multi_reduction <add>, %6, %cst_10 [1] : vector<13x32xf32> to vector<13xf32>
    %12 = vector.shape_cast %11 : vector<13xf32> to vector<13x1xf32>
    %cst_11 = arith.constant 3.200000e+01 : f32
    %13 = vector.broadcast %cst_11 : f32 to vector<13x1xf32>
    %14 = arith.divf %12, %13 : vector<13x1xf32>
    %15 = vector.broadcast %14 : vector<13x1xf32> to vector<13x32xf32>
    %16 = arith.subf %6, %15 : vector<13x32xf32>
    %17 = arith.mulf %16, %16 : vector<13x32xf32>
    %cst_12 = arith.constant dense<0.000000e+00> : vector<13xf32>
    %18 = vector.multi_reduction <add>, %17, %cst_12 [1] : vector<13x32xf32> to vector<13xf32>
    %19 = vector.shape_cast %18 : vector<13xf32> to vector<13x1xf32>
    %cst_13 = arith.constant 3.200000e+01 : f32
    %20 = vector.broadcast %cst_13 : f32 to vector<13x1xf32>
    %21 = arith.divf %19, %20 : vector<13x1xf32>
    %cst_14 = arith.constant 9.99999974E-6 : f32
    %22 = vector.broadcast %cst_14 : f32 to vector<13x1xf32>
    %23 = arith.addf %21, %22 : vector<13x1xf32>
    %24 = math.rsqrt %23 : vector<13x1xf32>
    %25 = vector.broadcast %24 : vector<13x1xf32> to vector<13x32xf32>
    %26 = arith.mulf %16, %25 : vector<13x32xf32>
    %27 = vector.broadcast %8 : vector<1x32xf32> to vector<13x32xf32>
    %28 = arith.mulf %26, %27 : vector<13x32xf32>
    %29 = vector.broadcast %10 : vector<1x32xf32> to vector<13x32xf32>
    %30 = arith.addf %28, %29 : vector<13x32xf32>
    %c0_15 = arith.constant 0 : index
    %c0_16 = arith.constant 0 : index
    %c0_17 = arith.constant 0 : index
    %31 = vector.load %arg5[%c0_15, %c0_16, %c0_17] : memref<2x32x192xf32, #tpu.memory_space<vmem>>, vector<1x32x192xf32>
    %32 = vector.shape_cast %31 : vector<1x32x192xf32> to vector<32x192xf32>
    %cst_18 = arith.constant dense<0.000000e+00> : vector<13x192xf32>
    %33 = tpu.matmul %30, %32, %cst_18 {dimension_numbers = #tpu.dot_dimension_numbers<[1], [0], [0], [1], [0, 0, 1, 1], [], []>} : vector<13x32xf32>, vector<32x192xf32>, vector<13x192xf32> -> vector<13x192xf32>
    %c0_19 = arith.constant 0 : index
    %c0_20 = arith.constant 0 : index
    %c0_21 = arith.constant 0 : index
    %34 = vector.load %arg6[%c0_19, %c0_20, %c0_21] : memref<2x1x192xf32, #tpu.memory_space<vmem>>, vector<1x1x192xf32>
    %35 = vector.shape_cast %34 : vector<1x1x192xf32> to vector<1x192xf32>
    %36 = vector.broadcast %35 : vector<1x192xf32> to vector<13x192xf32>
    %37 = arith.addf %33, %36 : vector<13x192xf32>
    %38 = vector.extract_strided_slice %37 {offsets = [0, 0], sizes = [13, 32], strides = [1, 1]} : vector<13x192xf32> to vector<13x32xf32>
    %39 = vector.extract_strided_slice %37 {offsets = [0, 32], sizes = [13, 32], strides = [1, 1]} : vector<13x192xf32> to vector<13x32xf32>
    %cst_22 = arith.constant 0.000000e+00 : f32
    %40 = vector.broadcast %cst_22 : f32 to vector<13x32xf32>
    %41 = vector.extract_strided_slice %38 {offsets = [0, 0], sizes = [13, 8], strides = [1, 1]} : vector<13x32xf32> to vector<13x8xf32>
    %42 = vector.extract_strided_slice %39 {offsets = [0, 0], sizes = [13, 8], strides = [1, 1]} : vector<13x32xf32> to vector<13x8xf32>
    %43 = vector.extract_strided_slice %37 {offsets = [0, 64], sizes = [13, 32], strides = [1, 1]} : vector<13x192xf32> to vector<13x32xf32>
    %cst_23 = arith.constant dense<0.000000e+00> : vector<13x13xf32>
    %44 = tpu.matmul %41, %42, %cst_23 {dimension_numbers = #tpu.dot_dimension_numbers<[1], [1], [0], [0], [0, 0, 1, 0], [], []>} : vector<13x8xf32>, vector<13x8xf32>, vector<13x13xf32> -> vector<13x13xf32>
    %cst_24 = arith.constant dense<0xFF800000> : vector<13xf32>
    %45 = vector.multi_reduction <maximumf>, %44, %cst_24 [1] : vector<13x13xf32> to vector<13xf32>
    %46 = vector.shape_cast %45 : vector<13xf32> to vector<13x1xf32>
    %47 = vector.broadcast %46 : vector<13x1xf32> to vector<13x13xf32>
    %48 = arith.subf %44, %47 : vector<13x13xf32>
    %49 = math.exp %48 : vector<13x13xf32>
    %cst_25 = arith.constant dense<0.000000e+00> : vector<13xf32>
    %50 = vector.multi_reduction <add>, %49, %cst_25 [1] : vector<13x13xf32> to vector<13xf32>
    %51 = vector.shape_cast %50 : vector<13xf32> to vector<13x1xf32>
    %52 = tpu.reciprocal %51 : vector<13x1xf32> -> vector<13x1xf32>
    %53 = vector.broadcast %52 : vector<13x1xf32> to vector<13x13xf32>
    %54 = arith.mulf %49, %53 : vector<13x13xf32>
    %cst_26 = arith.constant dense<0.000000e+00> : vector<13x32xf32>
    %55 = tpu.matmul %54, %43, %cst_26 {dimension_numbers = #tpu.dot_dimension_numbers<[1], [0], [0], [1], [0, 0, 1, 1], [], []>} : vector<13x13xf32>, vector<13x32xf32>, vector<13x32xf32> -> vector<13x32xf32>
    %56 = arith.addf %40, %55 : vector<13x32xf32>
    %57 = vector.extract_strided_slice %38 {offsets = [0, 8], sizes = [13, 8], strides = [1, 1]} : vector<13x32xf32> to vector<13x8xf32>
    %58 = vector.extract_strided_slice %39 {offsets = [0, 8], sizes = [13, 8], strides = [1, 1]} : vector<13x32xf32> to vector<13x8xf32>
    %59 = vector.extract_strided_slice %37 {offsets = [0, 96], sizes = [13, 32], strides = [1, 1]} : vector<13x192xf32> to vector<13x32xf32>
    %cst_27 = arith.constant dense<0.000000e+00> : vector<13x13xf32>
    %60 = tpu.matmul %57, %58, %cst_27 {dimension_numbers = #tpu.dot_dimension_numbers<[1], [1], [0], [0], [0, 0, 1, 0], [], []>} : vector<13x8xf32>, vector<13x8xf32>, vector<13x13xf32> -> vector<13x13xf32>
    %cst_28 = arith.constant dense<0xFF800000> : vector<13xf32>
    %61 = vector.multi_reduction <maximumf>, %60, %cst_28 [1] : vector<13x13xf32> to vector<13xf32>
    %62 = vector.shape_cast %61 : vector<13xf32> to vector<13x1xf32>
    %63 = vector.broadcast %62 : vector<13x1xf32> to vector<13x13xf32>
    %64 = arith.subf %60, %63 : vector<13x13xf32>
    %65 = math.exp %64 : vector<13x13xf32>
    %cst_29 = arith.constant dense<0.000000e+00> : vector<13xf32>
    %66 = vector.multi_reduction <add>, %65, %cst_29 [1] : vector<13x13xf32> to vector<13xf32>
    %67 = vector.shape_cast %66 : vector<13xf32> to vector<13x1xf32>
    %68 = tpu.reciprocal %67 : vector<13x1xf32> -> vector<13x1xf32>
    %69 = vector.broadcast %68 : vector<13x1xf32> to vector<13x13xf32>
    %70 = arith.mulf %65, %69 : vector<13x13xf32>
    %cst_30 = arith.constant dense<0.000000e+00> : vector<13x32xf32>
    %71 = tpu.matmul %70, %59, %cst_30 {dimension_numbers = #tpu.dot_dimension_numbers<[1], [0], [0], [1], [0, 0, 1, 1], [], []>} : vector<13x13xf32>, vector<13x32xf32>, vector<13x32xf32> -> vector<13x32xf32>
    %72 = arith.addf %56, %71 : vector<13x32xf32>
    %73 = vector.extract_strided_slice %38 {offsets = [0, 16], sizes = [13, 8], strides = [1, 1]} : vector<13x32xf32> to vector<13x8xf32>
    %74 = vector.extract_strided_slice %39 {offsets = [0, 16], sizes = [13, 8], strides = [1, 1]} : vector<13x32xf32> to vector<13x8xf32>
    %75 = vector.extract_strided_slice %37 {offsets = [0, 128], sizes = [13, 32], strides = [1, 1]} : vector<13x192xf32> to vector<13x32xf32>
    %cst_31 = arith.constant dense<0.000000e+00> : vector<13x13xf32>
    %76 = tpu.matmul %73, %74, %cst_31 {dimension_numbers = #tpu.dot_dimension_numbers<[1], [1], [0], [0], [0, 0, 1, 0], [], []>} : vector<13x8xf32>, vector<13x8xf32>, vector<13x13xf32> -> vector<13x13xf32>
    %cst_32 = arith.constant dense<0xFF800000> : vector<13xf32>
    %77 = vector.multi_reduction <maximumf>, %76, %cst_32 [1] : vector<13x13xf32> to vector<13xf32>
    %78 = vector.shape_cast %77 : vector<13xf32> to vector<13x1xf32>
    %79 = vector.broadcast %78 : vector<13x1xf32> to vector<13x13xf32>
    %80 = arith.subf %76, %79 : vector<13x13xf32>
    %81 = math.exp %80 : vector<13x13xf32>
    %cst_33 = arith.constant dense<0.000000e+00> : vector<13xf32>
    %82 = vector.multi_reduction <add>, %81, %cst_33 [1] : vector<13x13xf32> to vector<13xf32>
    %83 = vector.shape_cast %82 : vector<13xf32> to vector<13x1xf32>
    %84 = tpu.reciprocal %83 : vector<13x1xf32> -> vector<13x1xf32>
    %85 = vector.broadcast %84 : vector<13x1xf32> to vector<13x13xf32>
    %86 = arith.mulf %81, %85 : vector<13x13xf32>
    %cst_34 = arith.constant dense<0.000000e+00> : vector<13x32xf32>
    %87 = tpu.matmul %86, %75, %cst_34 {dimension_numbers = #tpu.dot_dimension_numbers<[1], [0], [0], [1], [0, 0, 1, 1], [], []>} : vector<13x13xf32>, vector<13x32xf32>, vector<13x32xf32> -> vector<13x32xf32>
    %88 = arith.addf %72, %87 : vector<13x32xf32>
    %89 = vector.extract_strided_slice %38 {offsets = [0, 24], sizes = [13, 8], strides = [1, 1]} : vector<13x32xf32> to vector<13x8xf32>
    %90 = vector.extract_strided_slice %39 {offsets = [0, 24], sizes = [13, 8], strides = [1, 1]} : vector<13x32xf32> to vector<13x8xf32>
    %91 = vector.extract_strided_slice %37 {offsets = [0, 160], sizes = [13, 32], strides = [1, 1]} : vector<13x192xf32> to vector<13x32xf32>
    %cst_35 = arith.constant dense<0.000000e+00> : vector<13x13xf32>
    %92 = tpu.matmul %89, %90, %cst_35 {dimension_numbers = #tpu.dot_dimension_numbers<[1], [1], [0], [0], [0, 0, 1, 0], [], []>} : vector<13x8xf32>, vector<13x8xf32>, vector<13x13xf32> -> vector<13x13xf32>
    %cst_36 = arith.constant dense<0xFF800000> : vector<13xf32>
    %93 = vector.multi_reduction <maximumf>, %92, %cst_36 [1] : vector<13x13xf32> to vector<13xf32>
    %94 = vector.shape_cast %93 : vector<13xf32> to vector<13x1xf32>
    %95 = vector.broadcast %94 : vector<13x1xf32> to vector<13x13xf32>
    %96 = arith.subf %92, %95 : vector<13x13xf32>
    %97 = math.exp %96 : vector<13x13xf32>
    %cst_37 = arith.constant dense<0.000000e+00> : vector<13xf32>
    %98 = vector.multi_reduction <add>, %97, %cst_37 [1] : vector<13x13xf32> to vector<13xf32>
    %99 = vector.shape_cast %98 : vector<13xf32> to vector<13x1xf32>
    %100 = tpu.reciprocal %99 : vector<13x1xf32> -> vector<13x1xf32>
    %101 = vector.broadcast %100 : vector<13x1xf32> to vector<13x13xf32>
    %102 = arith.mulf %97, %101 : vector<13x13xf32>
    %cst_38 = arith.constant dense<0.000000e+00> : vector<13x32xf32>
    %103 = tpu.matmul %102, %91, %cst_38 {dimension_numbers = #tpu.dot_dimension_numbers<[1], [0], [0], [1], [0, 0, 1, 1], [], []>} : vector<13x13xf32>, vector<13x32xf32>, vector<13x32xf32> -> vector<13x32xf32>
    %104 = arith.addf %88, %103 : vector<13x32xf32>
    %105 = arith.addf %6, %104 : vector<13x32xf32>
    %c0_39 = arith.constant 0 : index
    %c0_40 = arith.constant 0 : index
    %c0_41 = arith.constant 0 : index
    %106 = vector.load %arg7[%c0_39, %c0_40, %c0_41] : memref<2x1x32xf32, #tpu.memory_space<vmem>>, vector<1x1x32xf32>
    %107 = vector.shape_cast %106 : vector<1x1x32xf32> to vector<1x32xf32>
    %108 = vector.broadcast %107 : vector<1x32xf32> to vector<13x32xf32>
    %109 = arith.addf %105, %108 : vector<13x32xf32>
    %c0_42 = arith.constant 0 : index
    %c0_43 = arith.constant 0 : index
    %c0_44 = arith.constant 0 : index
    %110 = vector.load %arg8[%c0_42, %c0_43, %c0_44] : memref<2x1x32xf32, #tpu.memory_space<vmem>>, vector<1x1x32xf32>
    %111 = vector.shape_cast %110 : vector<1x1x32xf32> to vector<1x32xf32>
    %c0_45 = arith.constant 0 : index
    %c0_46 = arith.constant 0 : index
    %c0_47 = arith.constant 0 : index
    %112 = vector.load %arg9[%c0_45, %c0_46, %c0_47] : memref<2x1x32xf32, #tpu.memory_space<vmem>>, vector<1x1x32xf32>
    %113 = vector.shape_cast %112 : vector<1x1x32xf32> to vector<1x32xf32>
    %cst_48 = arith.constant dense<0.000000e+00> : vector<13xf32>
    %114 = vector.multi_reduction <add>, %109, %cst_48 [1] : vector<13x32xf32> to vector<13xf32>
    %115 = vector.shape_cast %114 : vector<13xf32> to vector<13x1xf32>
    %cst_49 = arith.constant 3.200000e+01 : f32
    %116 = vector.broadcast %cst_49 : f32 to vector<13x1xf32>
    %117 = arith.divf %115, %116 : vector<13x1xf32>
    %118 = vector.broadcast %117 : vector<13x1xf32> to vector<13x32xf32>
    %119 = arith.subf %109, %118 : vector<13x32xf32>
    %120 = arith.mulf %119, %119 : vector<13x32xf32>
    %cst_50 = arith.constant dense<0.000000e+00> : vector<13xf32>
    %121 = vector.multi_reduction <add>, %120, %cst_50 [1] : vector<13x32xf32> to vector<13xf32>
    %122 = vector.shape_cast %121 : vector<13xf32> to vector<13x1xf32>
    %cst_51 = arith.constant 3.200000e+01 : f32
    %123 = vector.broadcast %cst_51 : f32 to vector<13x1xf32>
    %124 = arith.divf %122, %123 : vector<13x1xf32>
    %cst_52 = arith.constant 9.99999974E-6 : f32
    %125 = vector.broadcast %cst_52 : f32 to vector<13x1xf32>
    %126 = arith.addf %124, %125 : vector<13x1xf32>
    %127 = math.rsqrt %126 : vector<13x1xf32>
    %128 = vector.broadcast %127 : vector<13x1xf32> to vector<13x32xf32>
    %129 = arith.mulf %119, %128 : vector<13x32xf32>
    %130 = vector.broadcast %111 : vector<1x32xf32> to vector<13x32xf32>
    %131 = arith.mulf %129, %130 : vector<13x32xf32>
    %132 = vector.broadcast %113 : vector<1x32xf32> to vector<13x32xf32>
    %133 = arith.addf %131, %132 : vector<13x32xf32>
    %c0_53 = arith.constant 0 : index
    %c0_54 = arith.constant 0 : index
    %c0_55 = arith.constant 0 : index
    %134 = vector.load %arg10[%c0_53, %c0_54, %c0_55] : memref<2x32x128xf32, #tpu.memory_space<vmem>>, vector<1x32x128xf32>
    %135 = vector.shape_cast %134 : vector<1x32x128xf32> to vector<32x128xf32>
    %cst_56 = arith.constant dense<0.000000e+00> : vector<13x128xf32>
    %136 = tpu.matmul %133, %135, %cst_56 {dimension_numbers = #tpu.dot_dimension_numbers<[1], [0], [0], [1], [0, 0, 1, 1], [], []>} : vector<13x32xf32>, vector<32x128xf32>, vector<13x128xf32> -> vector<13x128xf32>
    %c0_57 = arith.constant 0 : index
    %c0_58 = arith.constant 0 : index
    %c0_59 = arith.constant 0 : index
    %137 = vector.load %arg11[%c0_57, %c0_58, %c0_59] : memref<2x1x128xf32, #tpu.memory_space<vmem>>, vector<1x1x128xf32>
    %138 = vector.shape_cast %137 : vector<1x1x128xf32> to vector<1x128xf32>
    %139 = vector.broadcast %138 : vector<1x128xf32> to vector<13x128xf32>
    %140 = arith.addf %136, %139 : vector<13x128xf32>
    %cst_60 = arith.constant 5.000000e-01 : f32
    %141 = vector.broadcast %cst_60 : f32 to vector<13x128xf32>
    %142 = arith.mulf %141, %140 : vector<13x128xf32>
    %cst_61 = arith.constant 0.707106769 : f32
    %143 = vector.broadcast %cst_61 : f32 to vector<13x128xf32>
    %144 = arith.mulf %140, %143 : vector<13x128xf32>
    %cst_62 = arith.constant 0.000000e+00 : f32
    %145 = vector.broadcast %cst_62 : f32 to vector<13x128xf32>
    %146 = arith.cmpf olt, %144, %145 : vector<13x128xf32>
    %cst_63 = arith.constant -1.000000e+00 : f32
    %cst_64 = arith.constant 1.000000e+00 : f32
    %147 = vector.broadcast %cst_63 : f32 to vector<13x128xf32>
    %148 = vector.broadcast %cst_64 : f32 to vector<13x128xf32>
    %149 = arith.select %146, %147, %148 : vector<13x128xi1>, vector<13x128xf32>
    %150 = math.absf %144 : vector<13x128xf32>
    %cst_65 = arith.constant 0.327591091 : f32
    %151 = vector.broadcast %cst_65 : f32 to vector<13x128xf32>
    %152 = arith.mulf %151, %150 : vector<13x128xf32>
    %cst_66 = arith.constant 1.000000e+00 : f32
    %153 = vector.broadcast %cst_66 : f32 to vector<13x128xf32>
    %154 = arith.addf %153, %152 : vector<13x128xf32>
    %155 = tpu.reciprocal %154 : vector<13x128xf32> -> vector<13x128xf32>
    %cst_67 = arith.constant 1.06140542 : f32
    %156 = vector.broadcast %cst_67 : f32 to vector<13x128xf32>
    %157 = arith.mulf %156, %155 : vector<13x128xf32>
    %cst_68 = arith.constant -1.45315206 : f32
    %158 = vector.broadcast %cst_68 : f32 to vector<13x128xf32>
    %159 = arith.addf %157, %158 : vector<13x128xf32>
    %160 = arith.mulf %159, %155 : vector<13x128xf32>
    %cst_69 = arith.constant 1.42141378 : f32
    %161 = vector.broadcast %cst_69 : f32 to vector<13x128xf32>
    %162 = arith.addf %160, %161 : vector<13x128xf32>
    %163 = arith.mulf %162, %155 : vector<13x128xf32>
    %cst_70 = arith.constant -0.284496725 : f32
    %164 = vector.broadcast %cst_70 : f32 to vector<13x128xf32>
    %165 = arith.addf %163, %164 : vector<13x128xf32>
    %166 = arith.mulf %165, %155 : vector<13x128xf32>
    %cst_71 = arith.constant 0.254829586 : f32
    %167 = vector.broadcast %cst_71 : f32 to vector<13x128xf32>
    %168 = arith.addf %166, %167 : vector<13x128xf32>
    %169 = arith.mulf %168, %155 : vector<13x128xf32>
    %cst_72 = arith.constant 0.000000e+00 : f32
    %170 = vector.broadcast %cst_72 : f32 to vector<13x128xf32>
    %171 = arith.subf %170, %150 : vector<13x128xf32>
    %172 = arith.mulf %171, %150 : vector<13x128xf32>
    %173 = math.exp %172 : vector<13x128xf32>
    %174 = arith.mulf %169, %173 : vector<13x128xf32>
    %cst_73 = arith.constant 1.000000e+00 : f32
    %175 = vector.broadcast %cst_73 : f32 to vector<13x128xf32>
    %176 = arith.subf %175, %174 : vector<13x128xf32>
    %177 = arith.mulf %149, %176 : vector<13x128xf32>
    %cst_74 = arith.constant 1.000000e+00 : f32
    %178 = vector.broadcast %cst_74 : f32 to vector<13x128xf32>
    %179 = arith.addf %178, %177 : vector<13x128xf32>
    %180 = arith.mulf %142, %179 : vector<13x128xf32>
    %c0_75 = arith.constant 0 : index
    %c0_76 = arith.constant 0 : index
    %c0_77 = arith.constant 0 : index
    %181 = vector.load %arg12[%c0_75, %c0_76, %c0_77] : memref<2x128x32xf32, #tpu.memory_space<vmem>>, vector<1x128x32xf32>
    %182 = vector.shape_cast %181 : vector<1x128x32xf32> to vector<128x32xf32>
    %cst_78 = arith.constant dense<0.000000e+00> : vector<13x32xf32>
    %183 = tpu.matmul %180, %182, %cst_78 {dimension_numbers = #tpu.dot_dimension_numbers<[1], [0], [0], [1], [0, 0, 1, 1], [], []>} : vector<13x128xf32>, vector<128x32xf32>, vector<13x32xf32> -> vector<13x32xf32>
    %184 = arith.addf %109, %183 : vector<13x32xf32>
    %c0_79 = arith.constant 0 : index
    %c0_80 = arith.constant 0 : index
    %c0_81 = arith.constant 0 : index
    %185 = vector.load %arg13[%c0_79, %c0_80, %c0_81] : memref<2x1x32xf32, #tpu.memory_space<vmem>>, vector<1x1x32xf32>
    %186 = vector.shape_cast %185 : vector<1x1x32xf32> to vector<1x32xf32>
    %187 = vector.broadcast %186 : vector<1x32xf32> to vector<13x32xf32>
    %188 = arith.addf %184, %187 : vector<13x32xf32>
    %c1 = arith.constant 1 : index
    %c0_82 = arith.constant 0 : index
    %c0_83 = arith.constant 0 : index
    %189 = vector.load %arg3[%c1, %c0_82, %c0_83] : memref<2x1x32xf32, #tpu.memory_space<vmem>>, vector<1x1x32xf32>
    %190 = vector.shape_cast %189 : vector<1x1x32xf32> to vector<1x32xf32>
    %c1_84 = arith.constant 1 : index
    %c0_85 = arith.constant 0 : index
    %c0_86 = arith.constant 0 : index
    %191 = vector.load %arg4[%c1_84, %c0_85, %c0_86] : memref<2x1x32xf32, #tpu.memory_space<vmem>>, vector<1x1x32xf32>
    %192 = vector.shape_cast %191 : vector<1x1x32xf32> to vector<1x32xf32>
    %cst_87 = arith.constant dense<0.000000e+00> : vector<13xf32>
    %193 = vector.multi_reduction <add>, %188, %cst_87 [1] : vector<13x32xf32> to vector<13xf32>
    %194 = vector.shape_cast %193 : vector<13xf32> to vector<13x1xf32>
    %cst_88 = arith.constant 3.200000e+01 : f32
    %195 = vector.broadcast %cst_88 : f32 to vector<13x1xf32>
    %196 = arith.divf %194, %195 : vector<13x1xf32>
    %197 = vector.broadcast %196 : vector<13x1xf32> to vector<13x32xf32>
    %198 = arith.subf %188, %197 : vector<13x32xf32>
    %199 = arith.mulf %198, %198 : vector<13x32xf32>
    %cst_89 = arith.constant dense<0.000000e+00> : vector<13xf32>
    %200 = vector.multi_reduction <add>, %199, %cst_89 [1] : vector<13x32xf32> to vector<13xf32>
    %201 = vector.shape_cast %200 : vector<13xf32> to vector<13x1xf32>
    %cst_90 = arith.constant 3.200000e+01 : f32
    %202 = vector.broadcast %cst_90 : f32 to vector<13x1xf32>
    %203 = arith.divf %201, %202 : vector<13x1xf32>
    %cst_91 = arith.constant 9.99999974E-6 : f32
    %204 = vector.broadcast %cst_91 : f32 to vector<13x1xf32>
    %205 = arith.addf %203, %204 : vector<13x1xf32>
    %206 = math.rsqrt %205 : vector<13x1xf32>
    %207 = vector.broadcast %206 : vector<13x1xf32> to vector<13x32xf32>
    %208 = arith.mulf %198, %207 : vector<13x32xf32>
    %209 = vector.broadcast %190 : vector<1x32xf32> to vector<13x32xf32>
    %210 = arith.mulf %208, %209 : vector<13x32xf32>
    %211 = vector.broadcast %192 : vector<1x32xf32> to vector<13x32xf32>
    %212 = arith.addf %210, %211 : vector<13x32xf32>
    %c1_92 = arith.constant 1 : index
    %c0_93 = arith.constant 0 : index
    %c0_94 = arith.constant 0 : index
    %213 = vector.load %arg5[%c1_92, %c0_93, %c0_94] : memref<2x32x192xf32, #tpu.memory_space<vmem>>, vector<1x32x192xf32>
    %214 = vector.shape_cast %213 : vector<1x32x192xf32> to vector<32x192xf32>
    %cst_95 = arith.constant dense<0.000000e+00> : vector<13x192xf32>
    %215 = tpu.matmul %212, %214, %cst_95 {dimension_numbers = #tpu.dot_dimension_numbers<[1], [0], [0], [1], [0, 0, 1, 1], [], []>} : vector<13x32xf32>, vector<32x192xf32>, vector<13x192xf32> -> vector<13x192xf32>
    %c1_96 = arith.constant 1 : index
    %c0_97 = arith.constant 0 : index
    %c0_98 = arith.constant 0 : index
    %216 = vector.load %arg6[%c1_96, %c0_97, %c0_98] : memref<2x1x192xf32, #tpu.memory_space<vmem>>, vector<1x1x192xf32>
    %217 = vector.shape_cast %216 : vector<1x1x192xf32> to vector<1x192xf32>
    %218 = vector.broadcast %217 : vector<1x192xf32> to vector<13x192xf32>
    %219 = arith.addf %215, %218 : vector<13x192xf32>
    %220 = vector.extract_strided_slice %219 {offsets = [0, 0], sizes = [13, 32], strides = [1, 1]} : vector<13x192xf32> to vector<13x32xf32>
    %221 = vector.extract_strided_slice %219 {offsets = [0, 32], sizes = [13, 32], strides = [1, 1]} : vector<13x192xf32> to vector<13x32xf32>
    %cst_99 = arith.constant 0.000000e+00 : f32
    %222 = vector.broadcast %cst_99 : f32 to vector<13x32xf32>
    %223 = vector.extract_strided_slice %220 {offsets = [0, 0], sizes = [13, 8], strides = [1, 1]} : vector<13x32xf32> to vector<13x8xf32>
    %224 = vector.extract_strided_slice %221 {offsets = [0, 0], sizes = [13, 8], strides = [1, 1]} : vector<13x32xf32> to vector<13x8xf32>
    %225 = vector.extract_strided_slice %219 {offsets = [0, 64], sizes = [13, 32], strides = [1, 1]} : vector<13x192xf32> to vector<13x32xf32>
    %cst_100 = arith.constant dense<0.000000e+00> : vector<13x13xf32>
    %226 = tpu.matmul %223, %224, %cst_100 {dimension_numbers = #tpu.dot_dimension_numbers<[1], [1], [0], [0], [0, 0, 1, 0], [], []>} : vector<13x8xf32>, vector<13x8xf32>, vector<13x13xf32> -> vector<13x13xf32>
    %cst_101 = arith.constant dense<0xFF800000> : vector<13xf32>
    %227 = vector.multi_reduction <maximumf>, %226, %cst_101 [1] : vector<13x13xf32> to vector<13xf32>
    %228 = vector.shape_cast %227 : vector<13xf32> to vector<13x1xf32>
    %229 = vector.broadcast %228 : vector<13x1xf32> to vector<13x13xf32>
    %230 = arith.subf %226, %229 : vector<13x13xf32>
    %231 = math.exp %230 : vector<13x13xf32>
    %cst_102 = arith.constant dense<0.000000e+00> : vector<13xf32>
    %232 = vector.multi_reduction <add>, %231, %cst_102 [1] : vector<13x13xf32> to vector<13xf32>
    %233 = vector.shape_cast %232 : vector<13xf32> to vector<13x1xf32>
    %234 = tpu.reciprocal %233 : vector<13x1xf32> -> vector<13x1xf32>
    %235 = vector.broadcast %234 : vector<13x1xf32> to vector<13x13xf32>
    %236 = arith.mulf %231, %235 : vector<13x13xf32>
    %cst_103 = arith.constant dense<0.000000e+00> : vector<13x32xf32>
    %237 = tpu.matmul %236, %225, %cst_103 {dimension_numbers = #tpu.dot_dimension_numbers<[1], [0], [0], [1], [0, 0, 1, 1], [], []>} : vector<13x13xf32>, vector<13x32xf32>, vector<13x32xf32> -> vector<13x32xf32>
    %238 = arith.addf %222, %237 : vector<13x32xf32>
    %239 = vector.extract_strided_slice %220 {offsets = [0, 8], sizes = [13, 8], strides = [1, 1]} : vector<13x32xf32> to vector<13x8xf32>
    %240 = vector.extract_strided_slice %221 {offsets = [0, 8], sizes = [13, 8], strides = [1, 1]} : vector<13x32xf32> to vector<13x8xf32>
    %241 = vector.extract_strided_slice %219 {offsets = [0, 96], sizes = [13, 32], strides = [1, 1]} : vector<13x192xf32> to vector<13x32xf32>
    %cst_104 = arith.constant dense<0.000000e+00> : vector<13x13xf32>
    %242 = tpu.matmul %239, %240, %cst_104 {dimension_numbers = #tpu.dot_dimension_numbers<[1], [1], [0], [0], [0, 0, 1, 0], [], []>} : vector<13x8xf32>, vector<13x8xf32>, vector<13x13xf32> -> vector<13x13xf32>
    %cst_105 = arith.constant dense<0xFF800000> : vector<13xf32>
    %243 = vector.multi_reduction <maximumf>, %242, %cst_105 [1] : vector<13x13xf32> to vector<13xf32>
    %244 = vector.shape_cast %243 : vector<13xf32> to vector<13x1xf32>
    %245 = vector.broadcast %244 : vector<13x1xf32> to vector<13x13xf32>
    %246 = arith.subf %242, %245 : vector<13x13xf32>
    %247 = math.exp %246 : vector<13x13xf32>
    %cst_106 = arith.constant dense<0.000000e+00> : vector<13xf32>
    %248 = vector.multi_reduction <add>, %247, %cst_106 [1] : vector<13x13xf32> to vector<13xf32>
    %249 = vector.shape_cast %248 : vector<13xf32> to vector<13x1xf32>
    %250 = tpu.reciprocal %249 : vector<13x1xf32> -> vector<13x1xf32>
    %251 = vector.broadcast %250 : vector<13x1xf32> to vector<13x13xf32>
    %252 = arith.mulf %247, %251 : vector<13x13xf32>
    %cst_107 = arith.constant dense<0.000000e+00> : vector<13x32xf32>
    %253 = tpu.matmul %252, %241, %cst_107 {dimension_numbers = #tpu.dot_dimension_numbers<[1], [0], [0], [1], [0, 0, 1, 1], [], []>} : vector<13x13xf32>, vector<13x32xf32>, vector<13x32xf32> -> vector<13x32xf32>
    %254 = arith.addf %238, %253 : vector<13x32xf32>
    %255 = vector.extract_strided_slice %220 {offsets = [0, 16], sizes = [13, 8], strides = [1, 1]} : vector<13x32xf32> to vector<13x8xf32>
    %256 = vector.extract_strided_slice %221 {offsets = [0, 16], sizes = [13, 8], strides = [1, 1]} : vector<13x32xf32> to vector<13x8xf32>
    %257 = vector.extract_strided_slice %219 {offsets = [0, 128], sizes = [13, 32], strides = [1, 1]} : vector<13x192xf32> to vector<13x32xf32>
    %cst_108 = arith.constant dense<0.000000e+00> : vector<13x13xf32>
    %258 = tpu.matmul %255, %256, %cst_108 {dimension_numbers = #tpu.dot_dimension_numbers<[1], [1], [0], [0], [0, 0, 1, 0], [], []>} : vector<13x8xf32>, vector<13x8xf32>, vector<13x13xf32> -> vector<13x13xf32>
    %cst_109 = arith.constant dense<0xFF800000> : vector<13xf32>
    %259 = vector.multi_reduction <maximumf>, %258, %cst_109 [1] : vector<13x13xf32> to vector<13xf32>
    %260 = vector.shape_cast %259 : vector<13xf32> to vector<13x1xf32>
    %261 = vector.broadcast %260 : vector<13x1xf32> to vector<13x13xf32>
    %262 = arith.subf %258, %261 : vector<13x13xf32>
    %263 = math.exp %262 : vector<13x13xf32>
    %cst_110 = arith.constant dense<0.000000e+00> : vector<13xf32>
    %264 = vector.multi_reduction <add>, %263, %cst_110 [1] : vector<13x13xf32> to vector<13xf32>
    %265 = vector.shape_cast %264 : vector<13xf32> to vector<13x1xf32>
    %266 = tpu.reciprocal %265 : vector<13x1xf32> -> vector<13x1xf32>
    %267 = vector.broadcast %266 : vector<13x1xf32> to vector<13x13xf32>
    %268 = arith.mulf %263, %267 : vector<13x13xf32>
    %cst_111 = arith.constant dense<0.000000e+00> : vector<13x32xf32>
    %269 = tpu.matmul %268, %257, %cst_111 {dimension_numbers = #tpu.dot_dimension_numbers<[1], [0], [0], [1], [0, 0, 1, 1], [], []>} : vector<13x13xf32>, vector<13x32xf32>, vector<13x32xf32> -> vector<13x32xf32>
    %270 = arith.addf %254, %269 : vector<13x32xf32>
    %271 = vector.extract_strided_slice %220 {offsets = [0, 24], sizes = [13, 8], strides = [1, 1]} : vector<13x32xf32> to vector<13x8xf32>
    %272 = vector.extract_strided_slice %221 {offsets = [0, 24], sizes = [13, 8], strides = [1, 1]} : vector<13x32xf32> to vector<13x8xf32>
    %273 = vector.extract_strided_slice %219 {offsets = [0, 160], sizes = [13, 32], strides = [1, 1]} : vector<13x192xf32> to vector<13x32xf32>
    %cst_112 = arith.constant dense<0.000000e+00> : vector<13x13xf32>
    %274 = tpu.matmul %271, %272, %cst_112 {dimension_numbers = #tpu.dot_dimension_numbers<[1], [1], [0], [0], [0, 0, 1, 0], [], []>} : vector<13x8xf32>, vector<13x8xf32>, vector<13x13xf32> -> vector<13x13xf32>
    %cst_113 = arith.constant dense<0xFF800000> : vector<13xf32>
    %275 = vector.multi_reduction <maximumf>, %274, %cst_113 [1] : vector<13x13xf32> to vector<13xf32>
    %276 = vector.shape_cast %275 : vector<13xf32> to vector<13x1xf32>
    %277 = vector.broadcast %276 : vector<13x1xf32> to vector<13x13xf32>
    %278 = arith.subf %274, %277 : vector<13x13xf32>
    %279 = math.exp %278 : vector<13x13xf32>
    %cst_114 = arith.constant dense<0.000000e+00> : vector<13xf32>
    %280 = vector.multi_reduction <add>, %279, %cst_114 [1] : vector<13x13xf32> to vector<13xf32>
    %281 = vector.shape_cast %280 : vector<13xf32> to vector<13x1xf32>
    %282 = tpu.reciprocal %281 : vector<13x1xf32> -> vector<13x1xf32>
    %283 = vector.broadcast %282 : vector<13x1xf32> to vector<13x13xf32>
    %284 = arith.mulf %279, %283 : vector<13x13xf32>
    %cst_115 = arith.constant dense<0.000000e+00> : vector<13x32xf32>
    %285 = tpu.matmul %284, %273, %cst_115 {dimension_numbers = #tpu.dot_dimension_numbers<[1], [0], [0], [1], [0, 0, 1, 1], [], []>} : vector<13x13xf32>, vector<13x32xf32>, vector<13x32xf32> -> vector<13x32xf32>
    %286 = arith.addf %270, %285 : vector<13x32xf32>
    %287 = arith.addf %188, %286 : vector<13x32xf32>
    %c1_116 = arith.constant 1 : index
    %c0_117 = arith.constant 0 : index
    %c0_118 = arith.constant 0 : index
    %288 = vector.load %arg7[%c1_116, %c0_117, %c0_118] : memref<2x1x32xf32, #tpu.memory_space<vmem>>, vector<1x1x32xf32>
    %289 = vector.shape_cast %288 : vector<1x1x32xf32> to vector<1x32xf32>
    %290 = vector.broadcast %289 : vector<1x32xf32> to vector<13x32xf32>
    %291 = arith.addf %287, %290 : vector<13x32xf32>
    %c1_119 = arith.constant 1 : index
    %c0_120 = arith.constant 0 : index
    %c0_121 = arith.constant 0 : index
    %292 = vector.load %arg8[%c1_119, %c0_120, %c0_121] : memref<2x1x32xf32, #tpu.memory_space<vmem>>, vector<1x1x32xf32>
    %293 = vector.shape_cast %292 : vector<1x1x32xf32> to vector<1x32xf32>
    %c1_122 = arith.constant 1 : index
    %c0_123 = arith.constant 0 : index
    %c0_124 = arith.constant 0 : index
    %294 = vector.load %arg9[%c1_122, %c0_123, %c0_124] : memref<2x1x32xf32, #tpu.memory_space<vmem>>, vector<1x1x32xf32>
    %295 = vector.shape_cast %294 : vector<1x1x32xf32> to vector<1x32xf32>
    %cst_125 = arith.constant dense<0.000000e+00> : vector<13xf32>
    %296 = vector.multi_reduction <add>, %291, %cst_125 [1] : vector<13x32xf32> to vector<13xf32>
    %297 = vector.shape_cast %296 : vector<13xf32> to vector<13x1xf32>
    %cst_126 = arith.constant 3.200000e+01 : f32
    %298 = vector.broadcast %cst_126 : f32 to vector<13x1xf32>
    %299 = arith.divf %297, %298 : vector<13x1xf32>
    %300 = vector.broadcast %299 : vector<13x1xf32> to vector<13x32xf32>
    %301 = arith.subf %291, %300 : vector<13x32xf32>
    %302 = arith.mulf %301, %301 : vector<13x32xf32>
    %cst_127 = arith.constant dense<0.000000e+00> : vector<13xf32>
    %303 = vector.multi_reduction <add>, %302, %cst_127 [1] : vector<13x32xf32> to vector<13xf32>
    %304 = vector.shape_cast %303 : vector<13xf32> to vector<13x1xf32>
    %cst_128 = arith.constant 3.200000e+01 : f32
    %305 = vector.broadcast %cst_128 : f32 to vector<13x1xf32>
    %306 = arith.divf %304, %305 : vector<13x1xf32>
    %cst_129 = arith.constant 9.99999974E-6 : f32
    %307 = vector.broadcast %cst_129 : f32 to vector<13x1xf32>
    %308 = arith.addf %306, %307 : vector<13x1xf32>
    %309 = math.rsqrt %308 : vector<13x1xf32>
    %310 = vector.broadcast %309 : vector<13x1xf32> to vector<13x32xf32>
    %311 = arith.mulf %301, %310 : vector<13x32xf32>
    %312 = vector.broadcast %293 : vector<1x32xf32> to vector<13x32xf32>
    %313 = arith.mulf %311, %312 : vector<13x32xf32>
    %314 = vector.broadcast %295 : vector<1x32xf32> to vector<13x32xf32>
    %315 = arith.addf %313, %314 : vector<13x32xf32>
    %c1_130 = arith.constant 1 : index
    %c0_131 = arith.constant 0 : index
    %c0_132 = arith.constant 0 : index
    %316 = vector.load %arg10[%c1_130, %c0_131, %c0_132] : memref<2x32x128xf32, #tpu.memory_space<vmem>>, vector<1x32x128xf32>
    %317 = vector.shape_cast %316 : vector<1x32x128xf32> to vector<32x128xf32>
    %cst_133 = arith.constant dense<0.000000e+00> : vector<13x128xf32>
    %318 = tpu.matmul %315, %317, %cst_133 {dimension_numbers = #tpu.dot_dimension_numbers<[1], [0], [0], [1], [0, 0, 1, 1], [], []>} : vector<13x32xf32>, vector<32x128xf32>, vector<13x128xf32> -> vector<13x128xf32>
    %c1_134 = arith.constant 1 : index
    %c0_135 = arith.constant 0 : index
    %c0_136 = arith.constant 0 : index
    %319 = vector.load %arg11[%c1_134, %c0_135, %c0_136] : memref<2x1x128xf32, #tpu.memory_space<vmem>>, vector<1x1x128xf32>
    %320 = vector.shape_cast %319 : vector<1x1x128xf32> to vector<1x128xf32>
    %321 = vector.broadcast %320 : vector<1x128xf32> to vector<13x128xf32>
    %322 = arith.addf %318, %321 : vector<13x128xf32>
    %cst_137 = arith.constant 5.000000e-01 : f32
    %323 = vector.broadcast %cst_137 : f32 to vector<13x128xf32>
    %324 = arith.mulf %323, %322 : vector<13x128xf32>
    %cst_138 = arith.constant 0.707106769 : f32
    %325 = vector.broadcast %cst_138 : f32 to vector<13x128xf32>
    %326 = arith.mulf %322, %325 : vector<13x128xf32>
    %cst_139 = arith.constant 0.000000e+00 : f32
    %327 = vector.broadcast %cst_139 : f32 to vector<13x128xf32>
    %328 = arith.cmpf olt, %326, %327 : vector<13x128xf32>
    %cst_140 = arith.constant -1.000000e+00 : f32
    %cst_141 = arith.constant 1.000000e+00 : f32
    %329 = vector.broadcast %cst_140 : f32 to vector<13x128xf32>
    %330 = vector.broadcast %cst_141 : f32 to vector<13x128xf32>
    %331 = arith.select %328, %329, %330 : vector<13x128xi1>, vector<13x128xf32>
    %332 = math.absf %326 : vector<13x128xf32>
    %cst_142 = arith.constant 0.327591091 : f32
    %333 = vector.broadcast %cst_142 : f32 to vector<13x128xf32>
    %334 = arith.mulf %333, %332 : vector<13x128xf32>
    %cst_143 = arith.constant 1.000000e+00 : f32
    %335 = vector.broadcast %cst_143 : f32 to vector<13x128xf32>
    %336 = arith.addf %335, %334 : vector<13x128xf32>
    %337 = tpu.reciprocal %336 : vector<13x128xf32> -> vector<13x128xf32>
    %cst_144 = arith.constant 1.06140542 : f32
    %338 = vector.broadcast %cst_144 : f32 to vector<13x128xf32>
    %339 = arith.mulf %338, %337 : vector<13x128xf32>
    %cst_145 = arith.constant -1.45315206 : f32
    %340 = vector.broadcast %cst_145 : f32 to vector<13x128xf32>
    %341 = arith.addf %339, %340 : vector<13x128xf32>
    %342 = arith.mulf %341, %337 : vector<13x128xf32>
    %cst_146 = arith.constant 1.42141378 : f32
    %343 = vector.broadcast %cst_146 : f32 to vector<13x128xf32>
    %344 = arith.addf %342, %343 : vector<13x128xf32>
    %345 = arith.mulf %344, %337 : vector<13x128xf32>
    %cst_147 = arith.constant -0.284496725 : f32
    %346 = vector.broadcast %cst_147 : f32 to vector<13x128xf32>
    %347 = arith.addf %345, %346 : vector<13x128xf32>
    %348 = arith.mulf %347, %337 : vector<13x128xf32>
    %cst_148 = arith.constant 0.254829586 : f32
    %349 = vector.broadcast %cst_148 : f32 to vector<13x128xf32>
    %350 = arith.addf %348, %349 : vector<13x128xf32>
    %351 = arith.mulf %350, %337 : vector<13x128xf32>
    %cst_149 = arith.constant 0.000000e+00 : f32
    %352 = vector.broadcast %cst_149 : f32 to vector<13x128xf32>
    %353 = arith.subf %352, %332 : vector<13x128xf32>
    %354 = arith.mulf %353, %332 : vector<13x128xf32>
    %355 = math.exp %354 : vector<13x128xf32>
    %356 = arith.mulf %351, %355 : vector<13x128xf32>
    %cst_150 = arith.constant 1.000000e+00 : f32
    %357 = vector.broadcast %cst_150 : f32 to vector<13x128xf32>
    %358 = arith.subf %357, %356 : vector<13x128xf32>
    %359 = arith.mulf %331, %358 : vector<13x128xf32>
    %cst_151 = arith.constant 1.000000e+00 : f32
    %360 = vector.broadcast %cst_151 : f32 to vector<13x128xf32>
    %361 = arith.addf %360, %359 : vector<13x128xf32>
    %362 = arith.mulf %324, %361 : vector<13x128xf32>
    %c1_152 = arith.constant 1 : index
    %c0_153 = arith.constant 0 : index
    %c0_154 = arith.constant 0 : index
    %363 = vector.load %arg12[%c1_152, %c0_153, %c0_154] : memref<2x128x32xf32, #tpu.memory_space<vmem>>, vector<1x128x32xf32>
    %364 = vector.shape_cast %363 : vector<1x128x32xf32> to vector<128x32xf32>
    %cst_155 = arith.constant dense<0.000000e+00> : vector<13x32xf32>
    %365 = tpu.matmul %362, %364, %cst_155 {dimension_numbers = #tpu.dot_dimension_numbers<[1], [0], [0], [1], [0, 0, 1, 1], [], []>} : vector<13x128xf32>, vector<128x32xf32>, vector<13x32xf32> -> vector<13x32xf32>
    %366 = arith.addf %291, %365 : vector<13x32xf32>
    %c1_156 = arith.constant 1 : index
    %c0_157 = arith.constant 0 : index
    %c0_158 = arith.constant 0 : index
    %367 = vector.load %arg13[%c1_156, %c0_157, %c0_158] : memref<2x1x32xf32, #tpu.memory_space<vmem>>, vector<1x1x32xf32>
    %368 = vector.shape_cast %367 : vector<1x1x32xf32> to vector<1x32xf32>
    %369 = vector.broadcast %368 : vector<1x32xf32> to vector<13x32xf32>
    %370 = arith.addf %366, %369 : vector<13x32xf32>
    %c0_159 = arith.constant 0 : index
    %c0_160 = arith.constant 0 : index
    %371 = vector.load %arg14[%c0_159, %c0_160] : memref<1x32xf32, #tpu.memory_space<vmem>>, vector<1x32xf32>
    %c0_161 = arith.constant 0 : index
    %c0_162 = arith.constant 0 : index
    %372 = vector.load %arg15[%c0_161, %c0_162] : memref<1x32xf32, #tpu.memory_space<vmem>>, vector<1x32xf32>
    %cst_163 = arith.constant dense<0.000000e+00> : vector<13xf32>
    %373 = vector.multi_reduction <add>, %370, %cst_163 [1] : vector<13x32xf32> to vector<13xf32>
    %374 = vector.shape_cast %373 : vector<13xf32> to vector<13x1xf32>
    %cst_164 = arith.constant 3.200000e+01 : f32
    %375 = vector.broadcast %cst_164 : f32 to vector<13x1xf32>
    %376 = arith.divf %374, %375 : vector<13x1xf32>
    %377 = vector.broadcast %376 : vector<13x1xf32> to vector<13x32xf32>
    %378 = arith.subf %370, %377 : vector<13x32xf32>
    %379 = arith.mulf %378, %378 : vector<13x32xf32>
    %cst_165 = arith.constant dense<0.000000e+00> : vector<13xf32>
    %380 = vector.multi_reduction <add>, %379, %cst_165 [1] : vector<13x32xf32> to vector<13xf32>
    %381 = vector.shape_cast %380 : vector<13xf32> to vector<13x1xf32>
    %cst_166 = arith.constant 3.200000e+01 : f32
    %382 = vector.broadcast %cst_166 : f32 to vector<13x1xf32>
    %383 = arith.divf %381, %382 : vector<13x1xf32>
    %cst_167 = arith.constant 9.99999974E-6 : f32
    %384 = vector.broadcast %cst_167 : f32 to vector<13x1xf32>
    %385 = arith.addf %383, %384 : vector<13x1xf32>
    %386 = math.rsqrt %385 : vector<13x1xf32>
    %387 = vector.broadcast %386 : vector<13x1xf32> to vector<13x32xf32>
    %388 = arith.mulf %378, %387 : vector<13x32xf32>
    %389 = vector.broadcast %371 : vector<1x32xf32> to vector<13x32xf32>
    %390 = arith.mulf %388, %389 : vector<13x32xf32>
    %391 = vector.broadcast %372 : vector<1x32xf32> to vector<13x32xf32>
    %392 = arith.addf %390, %391 : vector<13x32xf32>
    %c0_168 = arith.constant 0 : index
    %c0_169 = arith.constant 0 : index
    %c0_170 = arith.constant 0 : index
    %393 = vector.load %arg16[%c0_168, %c0_169, %c0_170] : memref<1x13x32xf32, #tpu.memory_space<vmem>>, vector<1x13x32xf32>
    %394 = vector.shape_cast %393 : vector<1x13x32xf32> to vector<13x32xf32>
    %395 = vector.shape_cast %392 : vector<13x32xf32> to vector<1x13x32xf32>
    tpu.vector_store %arg16[%c0_168, %c0_169, %c0_170], %395 {strides = array<i32>} : memref<1x13x32xf32, #tpu.memory_space<vmem>>, vector<1x13x32xf32>,
    return
  }
  func.func @transform_0(%arg0: i32) -> (i32, i32, i32) {
    %c0_i32 = arith.constant 0 : i32
    %c0_i32_0 = arith.constant 0 : i32
    %c0_i32_1 = arith.constant 0 : i32
    return %arg0, %c0_i32, %c0_i32_0 : i32, i32, i32
  }
  func.func @transform_1(%arg0: i32) -> (i32, i32) {
    %c0_i32 = arith.constant 0 : i32
    %c0_i32_0 = arith.constant 0 : i32
    %c0_i32_1 = arith.constant 0 : i32
    return %c0_i32, %c0_i32_0 : i32, i32
  }
  func.func @transform_2(%arg0: i32) -> (i32, i32, i32) {
    %c0_i32 = arith.constant 0 : i32
    %c0_i32_0 = arith.constant 0 : i32
    %c0_i32_1 = arith.constant 0 : i32
    %c0_i32_2 = arith.constant 0 : i32
    return %c0_i32, %c0_i32_0, %c0_i32_1 : i32, i32, i32
  }
  func.func @transform_3(%arg0: i32) -> (i32, i32, i32) {
    %c0_i32 = arith.constant 0 : i32
    %c0_i32_0 = arith.constant 0 : i32
    %c0_i32_1 = arith.constant 0 : i32
    %c0_i32_2 = arith.constant 0 : i32
    return %c0_i32, %c0_i32_0, %c0_i32_1 : i32, i32, i32
  }
  func.func @transform_4(%arg0: i32) -> (i32, i32, i32) {
    %c0_i32 = arith.constant 0 : i32
    %c0_i32_0 = arith.constant 0 : i32
    %c0_i32_1 = arith.constant 0 : i32
    %c0_i32_2 = arith.constant 0 : i32
    return %c0_i32, %c0_i32_0, %c0_i32_1 : i32, i32, i32
  }
  func.func @transform_5(%arg0: i32) -> (i32, i32, i32) {
    %c0_i32 = arith.constant 0 : i32
    %c0_i32_0 = arith.constant 0 : i32
    %c0_i32_1 = arith.constant 0 : i32
    %c0_i32_2 = arith.constant 0 : i32
    return %c0_i32, %c0_i32_0, %c0_i32_1 : i32, i32, i32
  }
  func.func @transform_6(%arg0: i32) -> (i32, i32, i32) {
    %c0_i32 = arith.constant 0 : i32
    %c0_i32_0 = arith.constant 0 : i32
    %c0_i32_1 = arith.constant 0 : i32
    %c0_i32_2 = arith.constant 0 : i32
    return %c0_i32, %c0_i32_0, %c0_i32_1 : i32, i32, i32
  }
  func.func @transform_7(%arg0: i32) -> (i32, i32, i32) {
    %c0_i32 = arith.constant 0 : i32
    %c0_i32_0 = arith.constant 0 : i32
    %c0_i32_1 = arith.constant 0 : i32
    %c0_i32_2 = arith.constant 0 : i32
    return %c0_i32, %c0_i32_0, %c0_i32_1 : i32, i32, i32
  }
  func.func @transform_8(%arg0: i32) -> (i32, i32, i32) {
    %c0_i32 = arith.constant 0 : i32
    %c0_i32_0 = arith.constant 0 : i32
    %c0_i32_1 = arith.constant 0 : i32
    %c0_i32_2 = arith.constant 0 : i32
    return %c0_i32, %c0_i32_0, %c0_i32_1 : i32, i32, i32
  }
  func.func @transform_9(%arg0: i32) -> (i32, i32, i32) {
    %c0_i32 = arith.constant 0 : i32
    %c0_i32_0 = arith.constant 0 : i32
    %c0_i32_1 = arith.constant 0 : i32
    %c0_i32_2 = arith.constant 0 : i32
    return %c0_i32, %c0_i32_0, %c0_i32_1 : i32, i32, i32
  }
  func.func @transform_10(%arg0: i32) -> (i32, i32, i32) {
    %c0_i32 = arith.constant 0 : i32
    %c0_i32_0 = arith.constant 0 : i32
    %c0_i32_1 = arith.constant 0 : i32
    %c0_i32_2 = arith.constant 0 : i32
    return %c0_i32, %c0_i32_0, %c0_i32_1 : i32, i32, i32
  }
  func.func @transform_11(%arg0: i32) -> (i32, i32, i32) {
    %c0_i32 = arith.constant 0 : i32
    %c0_i32_0 = arith.constant 0 : i32
    %c0_i32_1 = arith.constant 0 : i32
    %c0_i32_2 = arith.constant 0 : i32
    return %c0_i32, %c0_i32_0, %c0_i32_1 : i32, i32, i32
  }
  func.func @transform_12(%arg0: i32) -> (i32, i32, i32) {
    %c0_i32 = arith.constant 0 : i32
    %c0_i32_0 = arith.constant 0 : i32
    %c0_i32_1 = arith.constant 0 : i32
    %c0_i32_2 = arith.constant 0 : i32
    return %c0_i32, %c0_i32_0, %c0_i32_1 : i32, i32, i32
  }
  func.func @transform_13(%arg0: i32) -> (i32, i32) {
    %c0_i32 = arith.constant 0 : i32
    %c0_i32_0 = arith.constant 0 : i32
    %c0_i32_1 = arith.constant 0 : i32
    return %c0_i32, %c0_i32_0 : i32, i32
  }
  func.func @transform_14(%arg0: i32) -> (i32, i32) {
    %c0_i32 = arith.constant 0 : i32
    %c0_i32_0 = arith.constant 0 : i32
    %c0_i32_1 = arith.constant 0 : i32
    return %c0_i32, %c0_i32_0 : i32, i32
  }
  func.func @transform_15(%arg0: i32) -> (i32, i32, i32) {
    %c0_i32 = arith.constant 0 : i32
    %c0_i32_0 = arith.constant 0 : i32
    %c0_i32_1 = arith.constant 0 : i32
    return %arg0, %c0_i32, %c0_i32_0 : i32, i32, i32
  }
}

</mosaic_0001>

<bundles_post_ra>
// kernel: _forward_impl.1
= control target key start
LH: loop header
LB: loop body
LE: loop exit
PB: predicated region body
PF: predicated region fallthrough
CT: control target
= control target key end

     0   :  { %s4188_s18 = smov 0   ;;  %s4802_s0 = inlined_call_operand.vmem [shape: f32[2,13,80], index: 0, kind: input, shape index: {}]   ;;  %s4803_s1 = inlined_call_operand.vmem [shape: f32[48,32], index: 1, kind: input, shape index: {}]   ;;  %s4804_s2 = inlined_call_operand.vmem [shape: f32[2,1,32], index: 2, kind: input, shape index: {}]   ;;  %s4805_s3 = inlined_call_operand.vmem [shape: f32[2,1,32], index: 3, kind: input, shape index: {}]   ;;  %s4806_s4 = inlined_call_operand.vmem [shape: f32[2,32,192], index: 4, kind: input, shape index: {}]   ;;  %s4807_s5 = inlined_call_operand.vmem [shape: f32[2,1,192], index: 5, kind: input, shape index: {}]   ;;  %s4808_s6 = inlined_call_operand.vmem [shape: f32[2,1,32], index: 6, kind: input, shape index: {}]   ;;  %s4809_s7 = inlined_call_operand.vmem [shape: f32[2,1,32], index: 7, kind: input, shape index: {}]   ;;  %s4810_s8 = inlined_call_operand.vmem [shape: f32[2,1,32], index: 8, kind: input, shape index: {}]   ;;  %s4811_s9 = inlined_call_operand.vmem [shape: f32[2,32,128], index: 9, kind: input, shape index: {}]   ;;  %s4812_s10 = inlined_call_operand.vmem [shape: f32[2,1,128], index: 10, kind: input, shape index: {}]   ;;  %s4813_s11 = inlined_call_operand.vmem [shape: f32[2,128,32], index: 11, kind: input, shape index: {}]   ;;  %s4814_s12 = inlined_call_operand.vmem [shape: f32[2,1,32], index: 12, kind: input, shape index: {}]   ;;  %s4815_s13 = inlined_call_operand.vmem [shape: f32[1,32], index: 13, kind: input, shape index: {}]   ;;  %s4816_s14 = inlined_call_operand.vmem [shape: f32[1,32], index: 14, kind: input, shape index: {}]   ;;  %s4817_s15 = inlined_call_operand.vmem [shape: f32[2,13,32], index: 15, kind: output, shape index: {}]  }
   0x1 LB: > { %s3212_s19 = sadd.s32 4294967295, %s4094_s18   ;;  %p3216_p0 = scmp.ge.s32.totalorder %s4094_s18, 1  ;;  %s4094_s18 = sphi %s4188_s18, %s25_s18  }
   0x2   : > { %p437_p1 = scmp.lt.s32.totalorder %s4094_s18, 3 }
   0x4   : > { %p438_p2 = pnand %p3216_p0, %p437_p1 }
   0x5   : > { %v497_v0 = vld [vmem:[%s4803_s1] sm:$0xff] (!%p438_p2)  ;;  %v498_v1 = vld [vmem:[%s4803_s1 + $0x8] sm:$0xff] (!%p438_p2)  ;;  %v499_v2 = vld [vmem:[%s4803_s1 + $0x10] sm:$0xff] (!%p438_p2)  ;;  %p485_p3 = scmp.lt.s32.totalorder (!%p438_p2), %s3212_s19, 1  ;;  %vm511_vm0 = vcmask (!%p438_p2), 392192   ;;  %s4826_s23 = smov (!%p438_p2), 80   ;;  %v648_v58 = vlaneseq (!%p438_p2) }
   0x6   : > { %441 = sbr.rel (%p438_p2) target bundleno = 5066 (0x13ca), region = 80  ;;  %v3682_v3 = vpack.c.bf16 (!%p438_p2), %v498_v1, %v497_v0  ;;  %v500_v4 = vld [vmem:[%s4803_s1 + $0x18] sm:$0xff] (!%p438_p2)  ;;  %v501_v6 = vld [vmem:[%s4803_s1 + $0x20] sm:$0xff] (!%p438_p2)  ;;  %v502_v7 = vld [vmem:[%s4803_s1 + $0x28] sm:$0xff] (!%p438_p2)  ;;  %vm593_vm1 = vcmask (!%p438_p2), 261120   ;;  %vm597_vm2 = vcmask (!%p438_p2), 258048  }
   0x7   : > { %v3686_v5 = vpack.c.bf16 (!%p438_p2), %v500_v4, %v499_v2  ;;  %v3690_v8 = vpack.c.bf16 (!%p438_p2), %v502_v7, %v501_v6  ;;  %v639_v29 = vld [vmem:[%s4806_s4 + $0x8] sm:$0xff] (!%p438_p2)  ;;  %v641_v30 = vld [vmem:[%s4806_s4 + $0x18] sm:$0xff] (!%p438_p2)  ;;  %v638_v32 = vld [vmem:[%s4806_s4] sm:$0xff] (!%p438_p2)  ;;  %v4097_v41 = vmov (!%p438_p2), 0.0   ;;  %v4270_v59 = vshrl.u32 (!%p438_p2), %v648_v58, 7  ;;  %s4098_s24 = smov (!%p438_p2), 88  }
   0x8   : > { %3683 = vmatprep.subr.bf16.mxu1 (!%p438_p2), %v3682_v3  ;;  %v3694_v31 = vpack.c.bf16 (!%p438_p2), %v641_v30, %v639_v29  ;;  %v640_v33 = vld [vmem:[%s4806_s4 + $0x10] sm:$0xff] (!%p438_p2)  ;;  %v643_v35 = vld [vmem:[%s4806_s4 + $0x28] sm:$0xff] (!%p438_p2)  ;;  %v645_v36 = vld [vmem:[%s4806_s4 + $0x38] sm:$0xff] (!%p438_p2)  ;;  %vm747_vm3 = vcmask (!%p438_p2), 64512   ;;  %s4099_s25 = smov (!%p438_p2), 120   ;;  %s4100_s26 = smov (!%p438_p2), 96  }
   0x9   : > { %3685 = vmatpush3.bf16.msra.mxu1 (!%p438_p2), %v3682_v3  ;;  %v3696_v34 = vpack.c.bf16 (!%p438_p2), %v640_v33, %v638_v32  ;;  %v3698_v37 = vpack.c.bf16 (!%p438_p2), %v645_v36, %v643_v35  ;;  %v642_v38 = vld [vmem:[%s4806_s4 + $0x20] sm:$0xff] (!%p438_p2)  ;;  %v644_v39 = vld [vmem:[%s4806_s4 + $0x30] sm:$0xff] (!%p438_p2)  ;;  %v650_v60 = vsub.s32 (!%p438_p2), 0, %v4270_v59  ;;  %v654_v63 = vsub.s32 (!%p438_p2), 1, %v4270_v59  ;;  %s4823_s27 = smov (!%p438_p2), 112   ;;  %s4825_s28 = smov (!%p438_p2), 72   ;;  %vm4310_vm4 = vmpackc.low (!%p438_p2), %vm747_vm3, %vm747_vm3 }
   0xa   : > { %3687 = vmatprep.subr.bf16.mxu1 (!%p438_p2), %v3686_v5  ;;  %v3700_v40 = vpack.c.bf16 (!%p438_p2), %v644_v39, %v642_v38  ;;  %v3223_v49 = vld [vmem:[%s4804_s2] ss:$0 sm:$0xff] (!%p438_p2)  ;;  %s4821_s29 = smov (!%p438_p2), 104   ;;  %vm835_vm5 = vcmask (!%p438_p2), 102400   ;;  %vm831_vm6 = vcmask (!%p438_p2), 105472   ;;  %s4820_s30 = smov (!%p438_p2), 32  }
   0xb   : > { %v3224_v51 = vld [vmem:[%s4805_s3] ss:$0 sm:$0xff] (!%p438_p2)  ;;  %s4819_s16 = smov (!%p438_p2), 64   ;;  %vm979_vm7 = vcmask (!%p438_p2), 1044480   ;;  %vm4106_vm8 = vmmov (!%p438_p2), 1  }
   0xc   : > { %v646_v61 = vld [vmem:[%s4807_s5] sm:$0x3] (!%p438_p2)  ;;  %vm4387_vm9 = vmpackc.low (!%p438_p2), %vm979_vm7, %vm4106_vm8 }
   0xd   : > { %s4839_s19 = smov (!%p485_p3, %s3212_s19), 1  ;;  %3689 = vmatpush3.bf16.msra.mxu1 %v3686_v5  ;;  %v651_v62 = vrot.slane %v646_v61, %v650_v60  ;;  %v655_v3 = vrot.slane %v646_v61, %v654_v63 }
   0xe   : > { %s4818_s17 = sshll.u32 %s4839_s19, 4  ;;  %3691 = vmatprep.subr.bf16.mxu1 %v3690_v8 }
   0xf   : > { %s489_s22 = scalar_lea.vmem %s4802_s0, %s4818_s17 }
  0x10   : > { %v495_v9 = vld [vmem:[%s489_s22] sm:$0xff]  ;;  %v496_v10 = vld [vmem:[%s489_s22 + $0x8] sm:$0x1f] }
  0x11   : > { %3475 = vmatprep.mubr.msk.f32.mxu1 %vm511_vm0, %v495_v9  ;;  %505 = vrot.lane.b32.xlu0 %v495_v9, %s4826_s23 }
  0x12   : > { %3693 = vmatpush3.bf16.msra.mxu1 %v3690_v8 }
  0x13   : > { %3695 = vmatprep.subr.bf16.mxu1 %v3694_v31 }
  0x15   : > { %507 = vrot.lane.b32.xlu0 %v496_v10, %s4826_s23  ;;  %3476 = vmatmul.mubr.msk.f32.vlgmr.msra.gmra.mrb[0].mxu1 %vm511_vm0, %v496_v10 }
  0x16   : > { %3697 = vmatpush1.bf16.msra.mxu1 %v3696_v34  ;;  %728 = vmatprep.mubr.f32.mxu1 %v4097_v41 }
  0x17   : > { %3699 = vmatprep.subr.bf16.mxu1 %v3698_v37 }
  0x1a   : > { %3701 = vmatpush1.bf16.msra.mxu1 %v3700_v40 }
  0x83   : > { %v506_v11 = vpop.permute.xlu0 %505 }
  0x87   : > { %v508_v13 = vpop.permute.xlu0 %507 }
  0xe8   : > { %v3477_v12 = vpop.f32.mrb[0].mxu1 }
  0xe9   : > { %v582_v14 = vpop.f32.mrb[1].mxu1  ;;  %v4226_v16 = vadd.f32 %v3477_v12, %v508_v13 }
  0xea   : > { %v4224_v15 = vadd.f32 %v582_v14, %v506_v11 }
  0xeb   : > { %v598_v18 = vsel %vm597_vm2, %v4226_v16, 0.0 }
  0xec   : > { %v594_v17 = vsel %vm593_vm1, %v4224_v15, 0.0 }
  0xed   : > { %595 = vadd.xlane.f32.xlu1 %v594_v17 }
  0xf1   : > { %599 = vadd.xlane.f32.xlu1 %v598_v18 }
 0x17a   : > { %v596_v19 = vpop.xlane.xlu1 %595 }
 0x17b   : > { %v602_v20 = vmul.f32 0.03125, %v596_v19 }
 0x17d   : > { %v604_v21 = vsub.f32 %v4224_v15, %v602_v20 }
 0x17e   : > { %v600_v22 = vpop.xlane.xlu1 %599 }
 0x17f   : > { %v603_v23 = vmul.f32 0.03125, %v600_v22  ;;  %v606_v24 = vmul.f32 %v604_v21, %v604_v21 }
 0x181   : > { %v605_v25 = vsub.f32 %v4226_v16, %v603_v23  ;;  %v608_v26 = vsel %vm593_vm1, %v606_v24, 0.0 }
 0x182   : > { %609 = vadd.xlane.f32.xlu0 %v608_v26 }
 0x183   : > { %v607_v27 = vmul.f32 %v605_v25, %v605_v25 }
 0x185   : > { %v611_v28 = vsel %vm597_vm2, %v607_v27, 0.0 }
 0x186   : > { %612 = vadd.xlane.f32.xlu1 %v611_v28 }
 0x20f   : > { %v610_v42 = vpop.xlane.xlu0 %609 }
 0x210   : > { %v614_v43 = vmul.f32 0.03125, %v610_v42 }
 0x212   : > { %v616_v44 = vadd.f32 1e-05, %v614_v43 }
 0x213   : > { %v613_v45 = vpop.xlane.xlu1 %612 }
 0x214   : > { %3988 = vrsqrt.f32 %v616_v44  ;;  %v615_v46 = vmul.f32 0.03125, %v613_v45 }
 0x216   : > { %v617_v47 = vadd.f32 1e-05, %v615_v46 }
 0x218   : > { %3990 = vrsqrt.f32 %v617_v47 }
 0x21e   : > { %v3989_v48 = vpop.eup %3988 }
 0x21f   : > { %v620_v50 = vmul.f32 %v3989_v48, %v604_v21 }
 0x221   : > { %v628_v52 = vmul.f32 %v3223_v49, %v620_v50 }
 0x222   : > { %v3991_v53 = vpop.eup %3990 }
 0x223   : > { %v636_v54 = vadd.f32 %v3224_v51, %v628_v52  ;;  %v621_v55 = vmul.f32 %v3991_v53, %v605_v25 }
 0x225   : > { %3225 = vmatmul.mubr.msk.f32.vlgmr.msra.gmra.mrb[2].mxu1 %vm593_vm1, %v636_v54  ;;  %v629_v56 = vmul.f32 %v3223_v49, %v621_v55 }
 0x226   : > { %734 = vmatprep.mubr.f32.mxu1 %v4097_v41 }
 0x227   : > { %v637_v57 = vadd.f32 %v3224_v51, %v629_v56 }
 0x229   : > { %3226 = vmatmul.mubr.msk.f32.gmra.mrb[4].mxu1 %vm593_vm1, %v637_v57 }
 0x2f8   : > { %v730_v0 = vpop.f32.mrb[2].mxu1 }
 0x2f9   : > { %v731_v1 = vadd.f32 %v730_v0, %v651_v62  ;;  %v732_v2 = vpop.f32.mrb[3].mxu1 }
 0x2fa   : > { %v4282_v7 = vadd.f32 %v732_v2, %v655_v3 }
 0x2fb   : > { %3482 = vmatprep.mubr.msk.f32.mxu1 %vm747_vm3, %v731_v1 }
 0x2fc   : > { %v736_v4 = vpop.f32.mrb[4].mxu1 }
 0x2fd   : > { %v737_v5 = vadd.f32 %v736_v4, %v651_v62  ;;  %v738_v6 = vpop.f32.mrb[5].mxu1 }
 0x2fe   : > { %v4284_v8 = vadd.f32 %v738_v6, %v655_v3 }
 0x2ff   : > { %v4286_v9 = vpack.i.bf16 %v737_v5, %v731_v1 }
 0x300   : > { %v3948_v10 = vpack.i.bf16 %v4284_v8, %v4282_v7  ;;  %v4292_v11 = vpack.c.bf16 %v4284_v8, %v4282_v7 }
 0x301   : > { %3929 = vrot.lane.b32.xlu0 %v4286_v9, %s4826_s23  ;;  %3919 = vrot.lane.b32.xlu1 %v4286_v9, %s4098_s24 }
 0x305   : > { %855 = vrot.lane.b32.xlu1 %v731_v1, %s4099_s25 }
 0x309   : > { %3924 = vrot.lane.b32.xlu1 %v4286_v9, %s4100_s26 }
 0x30d   : > { %857 = vrot.lane.b32.xlu1 %v737_v5, %s4099_s25 }
 0x311   : > { %1145 = vrot.lane.b32.xlu1 %v731_v1, %s4823_s27 }
 0x315   : > { %3934 = vrot.lane.b32.xlu1 %v4286_v9, %s4825_s28  ;;  %s4837_s28 = sshll.u32 %s4839_s19, 4 }
 0x316   : > { %s494_s17 = scalar_lea.vmem %s4817_s15, %s4837_s28 }
 0x319   : > { %1147 = vrot.lane.b32.xlu1 %v737_v5, %s4823_s27  ;;  %s4832_s27 = smov 72  }
 0x31d   : > { %1344 = vrot.lane.b32.xlu1 %v731_v1, %s4821_s29 }
 0x321   : > { %1346 = vrot.lane.b32.xlu1 %v737_v5, %s4821_s29  ;;  %s4833_s29 = smov 112  }
 0x373   : > { %v3930_v12 = vpop.permute.xlu0 %3929  ;;  %v3920_v13 = vpop.permute.xlu1 %3919 }
 0x374   : > { %v3932_v14 = vunpack.i.h.bf16 %v3930_v12  ;;  %v3931_v17 = vunpack.i.l.bf16 %v3930_v12  ;;  %v3922_v18 = vunpack.i.h.bf16 %v3920_v13  ;;  %v3921_v19 = vunpack.i.l.bf16 %v3920_v13 }
 0x376   : > { %v3708_v21 = vpack.c.bf16 %v3922_v18, %v3921_v19  ;;  %v3726_v23 = vpack.c.bf16 %v3932_v14, %v3931_v17 }
 0x377   : > { %v856_v22 = vpop.permute.xlu1 %855 }
 0x378   : > { %3710 = vmatprep.subr.msk.bf16.mxu0 %vm4310_vm4, %v3708_v21  ;;  %3489 = vmatprep.mubr.msk.f32.mxu0 %vm747_vm3, %v856_v22 }
 0x379   : > { %3713 = vmatpush3.bf16.xpose.msk.msra.mxu0 %vm4310_vm4, %v3708_v21 }
 0x37a   : > { %3728 = vmatprep.subr.msk.bf16.mxu0 %vm4310_vm4, %v3726_v23 }
 0x37b   : > { %v3925_v24 = vpop.permute.xlu1 %3924 }
 0x37c   : > { %v3927_v25 = vunpack.i.h.bf16 %v3925_v24  ;;  %v3926_v26 = vunpack.i.l.bf16 %v3925_v24 }
 0x37e   : > { %v3702_v27 = vpack.c.bf16 %v3927_v25, %v3926_v26 }
 0x37f   : > { %v858_v28 = vpop.permute.xlu1 %857 }
 0x380   : > { %3704 = vmatprep.subr.msk.bf16.mxu1 %vm4310_vm4, %v3702_v27  ;;  %3490 = vmatmul.mubr.msk.f32.vlgmr.msra.gmra.mrb[0].mxu0 %vm747_vm3, %v858_v28 }
 0x381   : > { %3707 = vmatpush3.bf16.xpose.msk.msra.mxu1 %vm4310_vm4, %v3702_v27  ;;  %3731 = vmatpush3.bf16.xpose.msk.msra.mxu0 %vm4310_vm4, %v3726_v23 }
 0x383   : > { %v1146_v29 = vpop.permute.xlu1 %1145 }
 0x384   : > { %3510 = vmatprep.mubr.msk.f32.mxu0 %vm747_vm3, %v1146_v29 }
 0x387   : > { %v3935_v30 = vpop.permute.xlu1 %3934 }
 0x388   : > { %v3937_v31 = vunpack.i.h.bf16 %v3935_v30  ;;  %v3936_v32 = vunpack.i.l.bf16 %v3935_v30  ;;  %3483 = vmatmul.mubr.msk.f32.vlgmr.msra.gmra.mrb[6].mxu1 %vm747_vm3, %v737_v5 }
 0x38a   : > { %v3738_v33 = vpack.c.bf16 %v3937_v31, %v3936_v32 }
 0x38b   : > { %v1148_v34 = vpop.permute.xlu1 %1147 }
 0x38c   : > { %3511 = vmatmul.mubr.msk.f32.vlgmr.msra.gmra.mrb[2].mxu0 %vm747_vm3, %v1148_v34  ;;  %3740 = vmatprep.subr.msk.bf16.mxu0 %vm4310_vm4, %v3738_v33 }
 0x38d   : > { %3743 = vmatpush3.bf16.xpose.msk.msra.mxu0 %vm4310_vm4, %v3738_v33 }
 0x38f   : > { %v1345_v35 = vpop.permute.xlu1 %1344 }
 0x390   : > { %3524 = vmatprep.mubr.msk.f32.mxu0 %vm747_vm3, %v1345_v35 }
 0x393   : > { %v1347_v36 = vpop.permute.xlu1 %1346 }
 0x394   : > { %3525 = vmatmul.mubr.msk.f32.vlgmr.msra.gmra.mrb[4].mxu0 %vm747_vm3, %v1347_v36 }
 0x453   : > { %v3491_v37 = vpop.f32.mrb[0].mxu0 }
 0x454   : > { %v937_v38 = vpop.f32.mrb[1].mxu0  ;;  %v949_v39 = vsel %vm835_vm5, %v3491_v37, -inf }
 0x455   : > { %950 = vmax.xlane.f32.xlu1 %v949_v39  ;;  %v946_v40 = vsel %vm831_vm6, %v937_v38, -inf }
 0x456   : > { %947 = vmax.xlane.f32.xlu0 %v946_v40 }
 0x45b   : > { %v3484_v42 = vpop.f32.mrb[6].mxu1 }
 0x45c   : > { %v4339_v43 = vpop.f32.mrb[7].mxu1  ;;  %v836_v48 = vsel %vm835_vm5, %v3484_v42, -inf }
 0x45d   : > { %v832_v44 = vsel %vm831_vm6, %v4339_v43, -inf }
 0x45e   : > { %833 = vmax.xlane.f32.xlu0 %v832_v44 }
 0x45f   : > { %v3512_v45 = vpop.f32.mrb[2].mxu0 }
 0x460   : > { %v4343_v46 = vpop.f32.mrb[3].mxu0  ;;  %v1239_v49 = vsel %vm835_vm5, %v3512_v45, -inf }
 0x461   : > { %v1236_v47 = vsel %vm831_vm6, %v4343_v46, -inf }
 0x462   : > { %1237 = vmax.xlane.f32.xlu1 %v1236_v47  ;;  %837 = vmax.xlane.f32.xlu0 %v836_v48 }
 0x466   : > { %1240 = vmax.xlane.f32.xlu0 %v1239_v49 }
 0x467   : > { %v3526_v50 = vpop.f32.mrb[4].mxu0 }
 0x468   : > { %v1426_v51 = vpop.f32.mrb[5].mxu0  ;;  %v1438_v52 = vsel %vm835_vm5, %v3526_v50, -inf }
 0x469   : > { %v1435_v53 = vsel %vm831_vm6, %v1426_v51, -inf }
 0x46a   : > { %1436 = vmax.xlane.f32.xlu1 %v1435_v53  ;;  %1439 = vmax.xlane.f32.xlu0 %v1438_v52 }
 0x4e2   : > { %v951_v54 = vpop.xlane.xlu1 %950 }
 0x4e3   : > { %v953_v55 = vsub.f32 %v3491_v37, %v951_v54  ;;  %v948_v56 = vpop.xlane.xlu0 %947 }
 0x4e4   : > { %v952_v57 = vsub.f32 %v937_v38, %v948_v56 }
 0x4e5   : > { %v956_v58 = vmul.f32 1.442695, %v953_v55 }
 0x4e6   : > { %v954_v61 = vmul.f32 1.442695, %v952_v57 }
 0x4e7   : > { %3992 = vpow2.f32 %v956_v58 }
 0x4e8   : > { %3994 = vpow2.f32 %v954_v61 }
 0x4eb   : > { %v834_v62 = vpop.xlane.xlu0 %833 }
 0x4ec   : > { %v839_v33 = vsub.f32 %v4339_v43, %v834_v62 }
 0x4ee   : > { %v841_v34 = vmul.f32 1.442695, %v839_v33 }
 0x4ef   : > { %v838_v0 = vpop.xlane.xlu0 %837  ;;  %v1238_v6 = vpop.xlane.xlu1 %1237 }
 0x4f0   : > { %v840_v1 = vsub.f32 %v3484_v42, %v838_v0  ;;  %v1242_v35 = vsub.f32 %v4343_v46, %v1238_v6 }
 0x4f1   : > { %v4351_v2 = vpop.eup %3992 }
 0x4f2   : > { %v4353_v3 = vpop.eup %3994  ;;  %v843_v4 = vmul.f32 1.442695, %v840_v1  ;;  %v961_v5 = vsel %vm835_vm5, %v4351_v2, 0.0  ;;  %v1244_v36 = vmul.f32 1.442695, %v1242_v35 }
 0x4f3   : > { %962 = vadd.xlane.f32.xlu0 %v961_v5  ;;  %v1241_v12 = vpop.xlane.xlu0 %1240  ;;  %v958_v13 = vsel %vm831_vm6, %v4353_v3, 0.0 }
 0x4f4   : > { %v1243_v14 = vsub.f32 %v3512_v45, %v1241_v12  ;;  %959 = vadd.xlane.f32.xlu1 %v958_v13  ;;  %3996 = vpow2.f32 %v843_v4 }
 0x4f6   : > { %v1246_v17 = vmul.f32 1.442695, %v1243_v14 }
 0x4f7   : > { %v1437_v18 = vpop.xlane.xlu1 %1436  ;;  %v1440_v19 = vpop.xlane.xlu0 %1439 }
 0x4f8   : > { %3998 = vpow2.f32 %v1246_v17  ;;  %v1441_v21 = vsub.f32 %v1426_v51, %v1437_v18  ;;  %v1442_v22 = vsub.f32 %v3526_v50, %v1440_v19 }
 0x4fa   : > { %v1445_v23 = vmul.f32 1.442695, %v1442_v22  ;;  %v1443_v24 = vmul.f32 1.442695, %v1441_v21  ;;  %v3255_v22 = vld [vmem:[%s4808_s6] ss:$0 sm:$0xff] }
 0x4fc   : > { %4000 = vpow2.f32 %v1445_v23 }
 0x4fd   : > { %4002 = vpow2.f32 %v1443_v24 }
 0x4fe   : > { %v4359_v25 = vpop.eup %3996  ;;  %4004 = vpow2.f32 %v841_v34 }
 0x4ff   : > { %v848_v26 = vsel %vm835_vm5, %v4359_v25, 0.0  ;;  %4006 = vpow2.f32 %v1244_v36 }
 0x500   : > { %849 = vadd.xlane.f32.xlu0 %v848_v26 }
 0x502   : > { %v4363_v27 = vpop.eup %3998 }
 0x503   : > { %v1251_v28 = vsel %vm835_vm5, %v4363_v27, 0.0 }
 0x504   : > { %1252 = vadd.xlane.f32.xlu0 %v1251_v28 }
 0x505   : > { %3939 = vrot.lane.b32.xlu1 %v4286_v9, %s4820_s30  ;;  %s4831_s30 = smov 80  }
 0x506   : > { %v4369_v29 = vpop.eup %4000 }
 0x507   : > { %v1450_v30 = vsel %vm835_vm5, %v4369_v29, 0.0  ;;  %v4373_v31 = vpop.eup %4002 }
 0x508   : > { %1451 = vadd.xlane.f32.xlu0 %v1450_v30  ;;  %v1447_v32 = vsel %vm831_vm6, %v4373_v31, 0.0  ;;  %v4005_v37 = vpop.eup %4004 }
 0x509   : > { %v845_v38 = vsel %vm831_vm6, %v4005_v37, 0.0  ;;  %v4007_v39 = vpop.eup %4006 }
 0x50a   : > { %v1248_v40 = vsel %vm831_vm6, %v4007_v39, 0.0 }
 0x50c   : > { %1448 = vadd.xlane.f32.xlu0 %v1447_v32 }
 0x522   : > { %3944 = vrot.lane.b32.xlu0 %v4286_v9, %s4819_s16  ;;  %s4834_s16 = smov 104  }
 0x529   : > { %846 = vadd.xlane.f32.xlu1 %v845_v38  ;;  %v1603_v38 = vld [vmem:[%s4811_s9] sm:$0xff] }
 0x52d   : > { %1249 = vadd.xlane.f32.xlu1 %v1248_v40 }
 0x53e   : > { %3949 = vrot.lane.b32.xlu1 %v3948_v10, %s4100_s26 }
 0x580   : > { %v963_v42 = vpop.xlane.xlu0 %962 }
 0x581   : > { %4008 = vrcp.f32 %v963_v42  ;;  %v960_v43 = vpop.xlane.xlu1 %959  ;;  %v1605_v42 = vld [vmem:[%s4811_s9 + $0x10] sm:$0xff] }
 0x582   : > { %4010 = vrcp.f32 %v960_v43  ;;  %v1606_v43 = vld [vmem:[%s4811_s9 + $0x18] sm:$0xff] }
 0x585   : > { %v3940_v44 = vpop.permute.xlu1 %3939 }
 0x586   : > { %v3942_v9 = vunpack.i.h.bf16 %v3940_v44  ;;  %v3941_v45 = vunpack.i.l.bf16 %v3940_v44  ;;  %v3754_v44 = vpack.c.bf16 %v1606_v43, %v1605_v42 }
 0x588   : > { %v3714_v47 = vpack.c.bf16 %v3942_v9, %v3941_v45 }
 0x58a   : > { %3716 = vmatprep.subr.msk.bf16.mxu1 %vm4387_vm9, %v3714_v47 }
 0x58b   : > { %v4009_v48 = vpop.eup %4008  ;;  %3719 = vmatpush3.bf16.msk.msra.mxu1 %vm4387_vm9, %v3714_v47 }
 0x58c   : > { %v4011_v7 = vpop.eup %4010  ;;  %v967_v10 = vmul.f32 %v4009_v48, %v4351_v2 }
 0x58d   : > { %v966_v8 = vmul.f32 %v4011_v7, %v4353_v3  ;;  %v850_v49 = vpop.xlane.xlu0 %849 }
 0x58e   : > { %4012 = vrcp.f32 %v850_v49  ;;  %v3256_v49 = vld [vmem:[%s4809_s7] ss:$0 sm:$0xff] }
 0x58f   : > { %3496 = vmatprep.mubr.msk.f32.mxu1 %vm831_vm6, %v966_v8 }
 0x590   : > { %3497 = vmatmul.mubr.msk.f32.vlgmr.msra.gmra.mrb[8].mxu1 %vm831_vm6, %v967_v10 }
 0x591   : > { %v1253_v50 = vpop.xlane.xlu0 %1252 }
 0x595   : > { %v1452_v51 = vpop.xlane.xlu0 %1451 }
 0x598   : > { %v4013_v62 = vpop.eup %4012 }
 0x599   : > { %v1449_v52 = vpop.xlane.xlu0 %1448  ;;  %v854_v4 = vmul.f32 %v4013_v62, %v4359_v25 }
 0x59d   : > { %v3945_v53 = vpop.permute.xlu0 %3944 }
 0x59e   : > { %v3947_v54 = vunpack.i.h.bf16 %v3945_v53  ;;  %v3946_v55 = vunpack.i.l.bf16 %v3945_v53 }
 0x5a0   : > { %v3720_v56 = vpack.c.bf16 %v3947_v54, %v3946_v55 }
 0x5a2   : > { %3722 = vmatprep.subr.msk.bf16.mxu1 %vm4387_vm9, %v3720_v56 }
 0x5a3   : > { %3725 = vmatpush3.bf16.msk.msra.mxu1 %vm4387_vm9, %v3720_v56 }
 0x5a4   : > { %3734 = vmatprep.subr.msk.bf16.mxu1 %vm4387_vm9, %v4292_v11 }
 0x5b6   : > { %v847_v57 = vpop.xlane.xlu1 %846 }
 0x5b7   : > { %4014 = vrcp.f32 %v847_v57 }
 0x5ba   : > { %v1250_v58 = vpop.xlane.xlu1 %1249 }
 0x5bb   : > { %4016 = vrcp.f32 %v1250_v58  ;;  %v1747_v58 = vld [vmem:[%s4813_s11] sm:$0xff] }
 0x5bc   : > { %4018 = vrcp.f32 %v1253_v50 }
 0x5bd   : > { %4020 = vrcp.f32 %v1449_v52 }
 0x5be   : > { %v3950_v61 = vpop.permute.xlu1 %3949  ;;  %4022 = vrcp.f32 %v1452_v51  ;;  %v3257_v51 = vld [vmem:[%s4810_s8] ss:$0 sm:$0xff] }
 0x5bf   : > { %v3952_v1 = vunpack.i.h.bf16 %v3950_v61  ;;  %v3951_v2 = vunpack.i.l.bf16 %v3950_v61  ;;  %v1748_v61 = vld [vmem:[%s4813_s11 + $0x8] sm:$0xff] }
 0x5c0   : > { %v3758_v62 = vpack.c.bf16 %v1748_v61, %v1747_v58 }
 0x5c1   : > { %v4015_v0 = vpop.eup %4014  ;;  %v3744_v6 = vpack.c.bf16 %v3952_v1, %v3951_v2  ;;  %v1750_v1 = vld [vmem:[%s4813_s11 + $0x18] sm:$0xff] }
 0x5c2   : > { %v853_v3 = vmul.f32 %v4015_v0, %v4005_v37  ;;  %3759 = vmatprep.subr.bf16.mxu0 %v3758_v62  ;;  %v1749_v0 = vld [vmem:[%s4813_s11 + $0x10] sm:$0xff] }
 0x5c3   : > { %3761 = vmatpush3.bf16.msra.mxu0 %v3758_v62  ;;  %v3762_v2 = vpack.c.bf16 %v1750_v1, %v1749_v0 }
 0x5c4   : > { %3503 = vmatprep.mubr.msk.f32.mxu1 %vm831_vm6, %v853_v3  ;;  %v1751_v3 = vld [vmem:[%s4813_s11 + $0x20] sm:$0xff] }
 0x5c5   : > { %v4017_v5 = vpop.eup %4016  ;;  %3504 = vmatmul.mubr.msk.f32.vlgmr.msra.gmra.mrb[8].mxu1 %vm831_vm6, %v854_v4  ;;  %3763 = vmatprep.subr.bf16.mxu0 %v3762_v2  ;;  %v1752_v4 = vld [vmem:[%s4813_s11 + $0x28] sm:$0xff] }
 0x5c6   : > { %3737 = vmatpush3.bf16.msk.msra.mxu1 %vm4387_vm9, %v4292_v11  ;;  %v1256_v12 = vmul.f32 %v4017_v5, %v4007_v39  ;;  %v4019_v13 = vpop.eup %4018  ;;  %v1604_v39 = vld [vmem:[%s4811_s9 + $0x8] sm:$0xff]  ;;  %v3766_v5 = vpack.c.bf16 %v1752_v4, %v1751_v3 }
 0x5c7   : > { %3746 = vmatprep.subr.msk.bf16.mxu1 %vm4387_vm9, %v3744_v6  ;;  %v4021_v14 = vpop.eup %4020  ;;  %v1257_v17 = vmul.f32 %v4019_v13, %v4363_v27  ;;  %v3750_v40 = vpack.c.bf16 %v1604_v39, %v1603_v38  ;;  %3765 = vmatpush3.bf16.msra.mxu0 %v3762_v2 }
 0x5c8   : > { %3517 = vmatprep.mubr.msk.f32.mxu1 %vm831_vm6, %v1256_v12  ;;  %v1455_v18 = vmul.f32 %v4021_v14, %v4373_v31  ;;  %v4023_v11 = vpop.eup %4022  ;;  %3767 = vmatprep.subr.bf16.mxu0 %v3766_v5  ;;  %v1754_v12 = vld [vmem:[%s4813_s11 + $0x38] sm:$0xff]  ;;  %v1755_v14 = vld [vmem:[%s4813_s11 + $0x40] sm:$0xff] }
 0x5c9   : > { %v1456_v19 = vmul.f32 %v4023_v11, %v4369_v29  ;;  %v1757_v11 = vld [vmem:[%s4813_s11 + $0x50] sm:$0xff] }
 0x5cb   : > { %3769 = vmatpush3.bf16.msra.mxu0 %v3766_v5 }
 0x5cd   : > { %3518 = vmatmul.mubr.msk.f32.vlgmr.msra.gmra.mrb[8].mxu1 %vm831_vm6, %v1257_v17  ;;  %v1756_v17 = vld [vmem:[%s4813_s11 + $0x48] sm:$0xff] }
 0x5ce   : > { %3749 = vmatpush3.bf16.msk.msra.mxu1 %vm4387_vm9, %v3744_v6  ;;  %3531 = vmatprep.mubr.msk.f32.mxu1 %vm831_vm6, %v1455_v18  ;;  %v1753_v6 = vld [vmem:[%s4813_s11 + $0x30] sm:$0xff]  ;;  %v3774_v18 = vpack.c.bf16 %v1756_v17, %v1755_v14  ;;  %v4107_v14 = vmov 1.0  }
 0x5cf   : > { %3751 = vmatprep.subr.bf16.mxu1 %v3750_v40  ;;  %v3770_v13 = vpack.c.bf16 %v1754_v12, %v1753_v6 }
 0x5d1   : > { %3771 = vmatprep.subr.bf16.mxu0 %v3770_v13 }
 0x5d2   : > { %3773 = vmatpush3.bf16.msra.mxu0 %v3770_v13 }
 0x5d3   : > { %3775 = vmatprep.subr.bf16.mxu0 %v3774_v18 }
 0x5d5   : > { %3532 = vmatmul.mubr.msk.f32.vlgmr.msra.gmra.mrb[8].mxu1 %vm831_vm6, %v1456_v19  ;;  %v1758_v19 = vld [vmem:[%s4813_s11 + $0x58] sm:$0xff] }
 0x5d6   : > { %3753 = vmatpush3.bf16.msra.mxu1 %v3750_v40  ;;  %3777 = vmatpush3.bf16.msra.mxu0 %v3774_v18 }
 0x5d7   : > { %3755 = vmatprep.subr.bf16.mxu1 %v3754_v44 }
 0x5da   : > { %3757 = vmatpush3.bf16.msra.mxu1 %v3754_v44 }
 0x6a8   : > { %v3533_v21 = vpop.f32.mrb[8].mxu1 }
 0x6a9   : > { %v1549_v23 = vadd.f32 %v3533_v21, %v4226_v16  ;;  %v1537_v24 = vpop.f32.mrb[9].mxu1  ;;  %v3778_v21 = vpack.c.bf16 %v1758_v19, %v1757_v11 }
 0x6aa   : > { %v1548_v25 = vadd.f32 %v1537_v24, %v4224_v15 }
 0x6ab   : > { %v4428_v26 = vadd.f32 %v3255_v22, %v1549_v23  ;;  %3779 = vmatprep.subr.bf16.mxu0 %v3778_v21  ;;  %v1760_v23 = vld [vmem:[%s4813_s11 + $0x68] sm:$0xff] }
 0x6ac   : > { %v4430_v27 = vadd.f32 %v3255_v22, %v1548_v25  ;;  %3781 = vmatpush3.bf16.msra.mxu0 %v3778_v21  ;;  %v1759_v22 = vld [vmem:[%s4813_s11 + $0x60] sm:$0xff]  ;;  %v1761_v25 = vld [vmem:[%s4813_s11 + $0x70] sm:$0xff] }
 0x6ad   : > { %v1564_v28 = vsel %vm597_vm2, %v4428_v26, 0.0  ;;  %v3782_v24 = vpack.c.bf16 %v1760_v23, %v1759_v22 }
 0x6ae   : > { %1565 = vadd.xlane.f32.xlu0 %v1564_v28  ;;  %v1561_v29 = vsel %vm593_vm1, %v4430_v27, 0.0  ;;  %v1762_v28 = vld [vmem:[%s4813_s11 + $0x78] sm:$0xff] }
 0x6af   : > { %1562 = vadd.xlane.f32.xlu1 %v1561_v29  ;;  %3783 = vmatprep.subr.bf16.mxu0 %v3782_v24  ;;  %v3786_v29 = vpack.c.bf16 %v1762_v28, %v1761_v25 }
 0x6b0   : > { %3785 = vmatpush3.bf16.msra.mxu0 %v3782_v24 }
 0x6b1   : > { %3787 = vmatprep.subr.bf16.mxu0 %v3786_v29 }
 0x6b4   : > { %3789 = vmatpush3.bf16.msra.mxu0 %v3786_v29 }
 0x73b   : > { %v1566_v30 = vpop.xlane.xlu0 %1565 }
 0x73c   : > { %v1568_v31 = vmul.f32 0.03125, %v1566_v30  ;;  %v1563_v32 = vpop.xlane.xlu1 %1562  ;;  %v3258_v30 = vld [vmem:[%s4812_s10] ss:$0 sm:$0xff] }
 0x73d   : > { %v1567_v33 = vmul.f32 0.03125, %v1563_v32 }
 0x73e   : > { %v1570_v16 = vsub.f32 %v4428_v26, %v1568_v31 }
 0x73f   : > { %v1569_v15 = vsub.f32 %v4430_v27, %v1567_v33 }
 0x740   : > { %v1572_v36 = vmul.f32 %v1570_v16, %v1570_v16 }
 0x741   : > { %v1571_v34 = vmul.f32 %v1569_v15, %v1569_v15 }
 0x742   : > { %v1576_v37 = vsel %vm597_vm2, %v1572_v36, 0.0 }
 0x743   : > { %v1573_v35 = vsel %vm593_vm1, %v1571_v34, 0.0 }
 0x744   : > { %1574 = vadd.xlane.f32.xlu1 %v1573_v35 }
 0x748   : > { %1577 = vadd.xlane.f32.xlu1 %v1576_v37 }
 0x7d1   : > { %v1575_v9 = vpop.xlane.xlu1 %1574 }
 0x7d2   : > { %v1579_v45 = vmul.f32 0.03125, %v1575_v9 }
 0x7d4   : > { %v1581_v47 = vadd.f32 1e-05, %v1579_v45 }
 0x7d5   : > { %v1578_v48 = vpop.xlane.xlu1 %1577 }
 0x7d6   : > { %4024 = vrsqrt.f32 %v1581_v47  ;;  %v1580_v7 = vmul.f32 0.03125, %v1578_v48 }
 0x7d8   : > { %v1582_v8 = vadd.f32 1e-05, %v1580_v7 }
 0x7da   : > { %4026 = vrsqrt.f32 %v1582_v8 }
 0x7e0   : > { %v4025_v10 = vpop.eup %4024 }
 0x7e1   : > { %v1585_v50 = vmul.f32 %v4025_v10, %v1569_v15 }
 0x7e3   : > { %v1593_v52 = vmul.f32 %v3256_v49, %v1585_v50 }
 0x7e4   : > { %v4027_v53 = vpop.eup %4026 }
 0x7e5   : > { %v1586_v54 = vmul.f32 %v4027_v53, %v1570_v16  ;;  %v1601_v55 = vadd.f32 %v3257_v51, %v1593_v52 }
 0x7e7   : > { %v1594_v56 = vmul.f32 %v3256_v49, %v1586_v54  ;;  %3542 = vmatprep.mubr.msk.f32.mxu1 %vm593_vm1, %v1601_v55 }
 0x7e9   : > { %v1602_v57 = vadd.f32 %v3257_v51, %v1594_v56 }
 0x7eb   : > { %3543 = vmatmul.mubr.msk.f32.vlgmr.msra.gmra.mrb[10].mxu1 %vm593_vm1, %v1602_v57 }
 0x7ec   : > { %1987 = vmatprep.mubr.f32.mxu1 %v4097_v41 }
 0x8be   : > { %v3544_v31 = vpop.f32.mrb[10].mxu1 }
 0x8bf   : > { %v1692_v32 = vadd.f32 %v3544_v31, %v3258_v30  ;;  %v1686_v33 = vpop.f32.mrb[11].mxu1  ;;  %v3261_v31 = vld [vmem:[%s4814_s12] ss:$0 sm:$0xff] }
 0x8c0   : > { %v1687_v16 = vadd.f32 %v3258_v30, %v1686_v33 }
 0x8c1   : > { %v1698_v15 = vmul.f32 0.70710677, %v1692_v32  ;;  %v1696_v25 = vmul.f32 0.5, %v1692_v32 }
 0x8c2   : > { %v1697_v34 = vmul.f32 0.70710677, %v1687_v16  ;;  %v1695_v23 = vmul.f32 0.5, %v1687_v16 }
 0x8c3   : > { %v1704_v35 = vand.u32 2147483647, %v1698_v15  ;;  %vm1700_vm10 = vcmp.lt.f32.partialorder %v1698_v15, 0.0 }
 0x8c4   : > { %v1703_v36 = vand.u32 2147483647, %v1697_v34  ;;  %vm1699_vm11 = vcmp.lt.f32.partialorder %v1697_v34, 0.0  ;;  %v1702_v17 = vsel %vm1700_vm10, -1.0, %v4107_v14 }
 0x8c5   : > { %v1706_v37 = vmul.f32 0.3275911, %v1704_v35  ;;  %v1730_v42 = vsub.f32 0.0, %v1704_v35  ;;  %v1701_v19 = vsel %vm1699_vm11, -1.0, %v4107_v14 }
 0x8c6   : > { %v1705_v38 = vmul.f32 0.3275911, %v1703_v36  ;;  %v1729_v43 = vsub.f32 0.0, %v1703_v36 }
 0x8c7   : > { %v1708_v39 = vadd.f32 1.0, %v1706_v37  ;;  %v1732_v9 = vmul.f32 %v1730_v42, %v1704_v35 }
 0x8c8   : > { %v1707_v40 = vadd.f32 1.0, %v1705_v38  ;;  %v1731_v48 = vmul.f32 %v1729_v43, %v1703_v36 }
 0x8c9   : > { %4028 = vrcp.f32 %v1708_v39  ;;  %v1735_v10 = vmul.f32 1.442695, %v1732_v9 }
 0x8ca   : > { %4030 = vrcp.f32 %v1707_v40  ;;  %v1733_v51 = vmul.f32 1.442695, %v1731_v48 }
 0x8cb   : > { %4032 = vpow2.f32 %v1735_v10 }
 0x8cc   : > { %4034 = vpow2.f32 %v1733_v51  ;;  %v3270_v51 = vld [vmem:[%s4806_s4 + $0x60] sm:$0xff] }
 0x8d3   : > { %v4029_v44 = vpop.eup %4028 }
 0x8d4   : > { %v4031_v45 = vpop.eup %4030  ;;  %v1712_v47 = vmul.f32 1.0614054, %v4029_v44 }
 0x8d5   : > { %v1711_v7 = vmul.f32 1.0614054, %v4031_v45  ;;  %v4033_v3 = vpop.eup %4032 }
 0x8d6   : > { %v1714_v8 = vadd.f32 -1.4531521, %v1712_v47  ;;  %v4035_v5 = vpop.eup %4034  ;;  %v3269_v47 = vld [vmem:[%s4806_s4 + $0x58] sm:$0xff] }
 0x8d7   : > { %v1713_v49 = vadd.f32 -1.4531521, %v1711_v7  ;;  %v3266_v7 = vld [vmem:[%s4806_s4 + $0x40] sm:$0xff] }
 0x8d8   : > { %v1716_v50 = vmul.f32 %v4029_v44, %v1714_v8  ;;  %v3268_v8 = vld [vmem:[%s4806_s4 + $0x50] sm:$0xff] }
 0x8d9   : > { %v1715_v52 = vmul.f32 %v4031_v45, %v1713_v49  ;;  %v3792_v10 = vpack.c.bf16 %v3268_v8, %v3266_v7  ;;  %v3271_v49 = vld [vmem:[%s4806_s4 + $0x68] sm:$0xff] }
 0x8da   : > { %v1718_v53 = vadd.f32 1.4214138, %v1716_v50  ;;  %v3273_v50 = vld [vmem:[%s4806_s4 + $0x78] sm:$0xff] }
 0x8db   : > { %v1717_v54 = vadd.f32 1.4214138, %v1715_v52  ;;  %v3794_v52 = vpack.c.bf16 %v3273_v50, %v3271_v49 }
 0x8dc   : > { %v1720_v55 = vmul.f32 %v4029_v44, %v1718_v53  ;;  %v3272_v53 = vld [vmem:[%s4806_s4 + $0x70] sm:$0xff] }
 0x8dd   : > { %v1719_v56 = vmul.f32 %v4031_v45, %v1717_v54  ;;  %v3796_v54 = vpack.c.bf16 %v3272_v53, %v3270_v51 }
 0x8de   : > { %v1722_v57 = vadd.f32 -0.28449672, %v1720_v55 }
 0x8df   : > { %v1721_v58 = vadd.f32 -0.28449672, %v1719_v56 }
 0x8e0   : > { %v1724_v61 = vmul.f32 %v4029_v44, %v1722_v57 }
 0x8e1   : > { %v1723_v62 = vmul.f32 %v4031_v45, %v1721_v58 }
 0x8e2   : > { %v1726_v0 = vadd.f32 0.2548296, %v1724_v61 }
 0x8e3   : > { %v1725_v1 = vadd.f32 0.2548296, %v1723_v62 }
 0x8e4   : > { %v1728_v2 = vmul.f32 %v4029_v44, %v1726_v0 }
 0x8e5   : > { %v1727_v4 = vmul.f32 %v4031_v45, %v1725_v1  ;;  %v3267_v45 = vld [vmem:[%s4806_s4 + $0x48] sm:$0xff] }
 0x8e6   : > { %v1738_v6 = vmul.f32 %v4033_v3, %v1728_v2  ;;  %v3790_v48 = vpack.c.bf16 %v3269_v47, %v3267_v45  ;;  %v3264_v2 = vld [vmem:[%s4804_s2 + $0x1] ss:$0 sm:$0xff] }
 0x8e7   : > { %v1737_v12 = vmul.f32 %v4035_v5, %v1727_v4  ;;  %v3265_v5 = vld [vmem:[%s4805_s3 + $0x1] ss:$0 sm:$0xff] }
 0x8e8   : > { %v1740_v13 = vsub.f32 1.0, %v1738_v6  ;;  %3791 = vmatprep.subr.bf16.mxu1 %v3790_v48 }
 0x8e9   : > { %v1739_v18 = vsub.f32 1.0, %v1737_v12  ;;  %3793 = vmatpush1.bf16.msra.mxu1 %v3792_v10 }
 0x8ea   : > { %v1742_v11 = vmul.f32 %v1740_v13, %v1702_v17  ;;  %3795 = vmatprep.subr.bf16.mxu1 %v3794_v52 }
 0x8eb   : > { %v1741_v21 = vmul.f32 %v1739_v18, %v1701_v19  ;;  %v3274_v18 = vld [vmem:[%s4807_s5 + $0x2] sm:$0x3] }
 0x8ec   : > { %v1744_v22 = vadd.f32 1.0, %v1742_v11  ;;  %v1910_v11 = vrot.slane %v3274_v18, %v650_v60 }
 0x8ed   : > { %v1743_v24 = vadd.f32 1.0, %v1741_v21  ;;  %3797 = vmatpush1.bf16.msra.mxu1 %v3796_v54 }
 0x8ee   : > { %v1746_v29 = vmul.f32 %v1744_v22, %v1696_v25 }
 0x8ef   : > { %v1745_v28 = vmul.f32 %v1743_v24, %v1695_v23  ;;  %v1914_v23 = vrot.slane %v3274_v18, %v654_v63 }
 0x8f1   : > { %3577 = vmatprep.mubr.f32.mxu0 %v1745_v28 }
 0x8f2   : > { %3578 = vmatmul.mubr.f32.vlgmr.msra.gmra.mrb[6].mxu0 %v1746_v29 }
 0x9c5   : > { %v3579_v30 = vpop.f32.mrb[6].mxu0 }
 0x9c6   : > { %v1839_v33 = vadd.f32 %v3579_v30, %v4428_v26  ;;  %v1829_v15 = vpop.f32.mrb[7].mxu0 }
 0x9c7   : > { %v1838_v34 = vadd.f32 %v1829_v15, %v4430_v27 }
 0x9c8   : > { %v4519_v35 = vadd.f32 %v3261_v31, %v1839_v33 }
 0x9c9   : > { %v4521_v36 = vadd.f32 %v3261_v31, %v1838_v34 }
 0x9ca   : > { %v1856_v32 = vsel %vm597_vm2, %v4519_v35, 0.0 }
 0x9cb   : > { %1857 = vadd.xlane.f32.xlu1 %v1856_v32  ;;  %v1853_v16 = vsel %vm593_vm1, %v4521_v36, 0.0 }
 0x9cc   : > { %1854 = vadd.xlane.f32.xlu0 %v1853_v16 }
 0xa58   : > { %v1858_v37 = vpop.xlane.xlu1 %1857 }
 0xa59   : > { %v1860_v38 = vmul.f32 0.03125, %v1858_v37  ;;  %v1855_v39 = vpop.xlane.xlu0 %1854 }
 0xa5a   : > { %v1859_v40 = vmul.f32 0.03125, %v1855_v39 }
 0xa5b   : > { %v1862_v26 = vsub.f32 %v4519_v35, %v1860_v38 }
 0xa5c   : > { %v1861_v27 = vsub.f32 %v4521_v36, %v1859_v40 }
 0xa5d   : > { %v1864_v42 = vmul.f32 %v1862_v26, %v1862_v26 }
 0xa5e   : > { %v1863_v43 = vmul.f32 %v1861_v27, %v1861_v27 }
 0xa5f   : > { %v1868_v44 = vsel %vm597_vm2, %v1864_v42, 0.0 }
 0xa60   : > { %1869 = vadd.xlane.f32.xlu1 %v1868_v44  ;;  %v1865_v9 = vsel %vm593_vm1, %v1863_v43, 0.0 }
 0xa61   : > { %1866 = vadd.xlane.f32.xlu0 %v1865_v9 }
 0xaed   : > { %v1870_v55 = vpop.xlane.xlu1 %1869 }
 0xaee   : > { %v1872_v56 = vmul.f32 0.03125, %v1870_v55  ;;  %v1867_v57 = vpop.xlane.xlu0 %1866 }
 0xaef   : > { %v1871_v58 = vmul.f32 0.03125, %v1867_v57 }
 0xaf0   : > { %v1874_v61 = vadd.f32 1e-05, %v1872_v56 }
 0xaf1   : > { %v1873_v62 = vadd.f32 1e-05, %v1871_v58 }
 0xaf2   : > { %4036 = vrsqrt.f32 %v1874_v61 }
 0xaf3   : > { %4038 = vrsqrt.f32 %v1873_v62 }
 0xafc   : > { %v4037_v0 = vpop.eup %4036 }
 0xafd   : > { %v4039_v1 = vpop.eup %4038  ;;  %v1878_v4 = vmul.f32 %v4037_v0, %v1862_v26 }
 0xafe   : > { %v1877_v3 = vmul.f32 %v4039_v1, %v1861_v27 }
 0xaff   : > { %v1886_v13 = vmul.f32 %v3264_v2, %v1878_v4 }
 0xb00   : > { %v1885_v6 = vmul.f32 %v3264_v2, %v1877_v3 }
 0xb01   : > { %v1894_v17 = vadd.f32 %v3265_v5, %v1886_v13 }
 0xb02   : > { %v1893_v12 = vadd.f32 %v3265_v5, %v1885_v6 }
 0xb04   : > { %3275 = vmatmul.mubr.msk.f32.vlgmr.msra.gmra.mrb[12].mxu1 %vm593_vm1, %v1893_v12 }
 0xb05   : > { %1993 = vmatprep.mubr.f32.mxu1 %v4097_v41 }
 0xb08   : > { %3276 = vmatmul.mubr.msk.f32.gmra.mrb[14].mxu1 %vm593_vm1, %v1894_v17 }
 0xbd7   : > { %v1989_v19 = vpop.f32.mrb[12].mxu1 }
 0xbd8   : > { %v1990_v21 = vadd.f32 %v1989_v19, %v1910_v11  ;;  %v1991_v22 = vpop.f32.mrb[13].mxu1 }
 0xbd9   : > { %v4572_v28 = vadd.f32 %v1991_v22, %v1914_v23 }
 0xbda   : > { %3584 = vmatprep.mubr.msk.f32.mxu1 %vm747_vm3, %v1990_v21 }
 0xbdb   : > { %v1995_v24 = vpop.f32.mrb[14].mxu1 }
 0xbdc   : > { %v1996_v41 = vadd.f32 %v1995_v24, %v1910_v11  ;;  %v1997_v25 = vpop.f32.mrb[15].mxu1 }
 0xbdd   : > { %v4574_v29 = vadd.f32 %v1997_v25, %v1914_v23 }
 0xbde   : > { %v4576_v30 = vpack.i.bf16 %v1996_v41, %v1990_v21 }
 0xbdf   : > { %v3983_v60 = vpack.i.bf16 %v4574_v29, %v4572_v28  ;;  %v4582_v31 = vpack.c.bf16 %v4574_v29, %v4572_v28 }
 0xbe0   : > { %3959 = vrot.lane.b32.xlu1 %v4576_v30, %s4098_s24  ;;  %3954 = vrot.lane.b32.xlu0 %v4576_v30, %s4100_s26  ;;  %s4835_s24 = smov 32  }
 0xbe4   : > { %2111 = vrot.lane.b32.xlu1 %v1990_v21, %s4099_s25  ;;  %2113 = vrot.lane.b32.xlu0 %v1996_v41, %s4099_s25  ;;  %s4836_s25 = smov 64  }
 0xbe8   : > { %3964 = vrot.lane.b32.xlu1 %v4576_v30, %s4831_s30  ;;  %3969 = vrot.lane.b32.xlu0 %v4576_v30, %s4832_s27 }
 0xbec   : > { %2400 = vrot.lane.b32.xlu1 %v1990_v21, %s4833_s29  ;;  %2402 = vrot.lane.b32.xlu0 %v1996_v41, %s4833_s29 }
 0xbf0   : > { %2599 = vrot.lane.b32.xlu1 %v1990_v21, %s4834_s16  ;;  %2601 = vrot.lane.b32.xlu0 %v1996_v41, %s4834_s16 }
 0xc52   : > { %v3960_v59 = vpop.permute.xlu1 %3959  ;;  %v3955_v63 = vpop.permute.xlu0 %3954 }
 0xc53   : > { %v3962_v33 = vunpack.i.h.bf16 %v3960_v59  ;;  %v3961_v15 = vunpack.i.l.bf16 %v3960_v59  ;;  %v3957_v34 = vunpack.i.h.bf16 %v3955_v63  ;;  %v3956_v32 = vunpack.i.l.bf16 %v3955_v63 }
 0xc55   : > { %v3798_v16 = vpack.c.bf16 %v3957_v34, %v3956_v32  ;;  %v3804_v39 = vpack.c.bf16 %v3962_v33, %v3961_v15 }
 0xc56   : > { %v2112_v37 = vpop.permute.xlu1 %2111  ;;  %v2114_v38 = vpop.permute.xlu0 %2113 }
 0xc57   : > { %3800 = vmatprep.subr.msk.bf16.mxu1 %vm4310_vm4, %v3798_v16 }
 0xc58   : > { %3803 = vmatpush3.bf16.xpose.msk.msra.mxu1 %vm4310_vm4, %v3798_v16 }
 0xc59   : > { %3806 = vmatprep.subr.msk.bf16.mxu1 %vm4310_vm4, %v3804_v39 }
 0xc5a   : > { %v3965_v40 = vpop.permute.xlu1 %3964  ;;  %v3970_v26 = vpop.permute.xlu0 %3969 }
 0xc5b   : > { %v3967_v27 = vunpack.i.h.bf16 %v3965_v40  ;;  %v3966_v42 = vunpack.i.l.bf16 %v3965_v40  ;;  %v3972_v43 = vunpack.i.h.bf16 %v3970_v26  ;;  %v3971_v44 = vunpack.i.l.bf16 %v3970_v26 }
 0xc5d   : > { %v3822_v9 = vpack.c.bf16 %v3967_v27, %v3966_v42  ;;  %v3834_v47 = vpack.c.bf16 %v3972_v43, %v3971_v44 }
 0xc5e   : > { %v2401_v45 = vpop.permute.xlu1 %2400  ;;  %v2403_v48 = vpop.permute.xlu0 %2402 }
 0xc5f   : > { %3585 = vmatmul.mubr.msk.f32.vlgmr.msra.gmra.mrb[16].mxu1 %vm747_vm3, %v1996_v41  ;;  %3824 = vmatprep.subr.msk.bf16.mxu0 %vm4310_vm4, %v3822_v9 }
 0xc60   : > { %3612 = vmatprep.mubr.msk.f32.mxu0 %vm747_vm3, %v2401_v45  ;;  %3809 = vmatpush3.bf16.xpose.msk.msra.mxu1 %vm4310_vm4, %v3804_v39 }
 0xc61   : > { %3591 = vmatprep.mubr.msk.f32.mxu1 %vm747_vm3, %v2112_v37  ;;  %3827 = vmatpush3.bf16.xpose.msk.msra.mxu0 %vm4310_vm4, %v3822_v9 }
 0xc62   : > { %3836 = vmatprep.subr.msk.bf16.mxu0 %vm4310_vm4, %v3834_v47  ;;  %v2600_v7 = vpop.permute.xlu1 %2599  ;;  %v2602_v8 = vpop.permute.xlu0 %2601 }
 0xc67   : > { %3592 = vmatmul.mubr.msk.f32.vlgmr.msra.gmra.mrb[18].mxu1 %vm747_vm3, %v2114_v38 }
 0xc68   : > { %3613 = vmatmul.mubr.msk.f32.vlgmr.msra.gmra.mrb[8].mxu0 %vm747_vm3, %v2403_v48 }
 0xc69   : > { %3839 = vmatpush3.bf16.xpose.msk.msra.mxu0 %vm4310_vm4, %v3834_v47  ;;  %3626 = vmatprep.mubr.msk.f32.mxu0 %vm747_vm3, %v2600_v7 }
 0xc70   : > { %3627 = vmatmul.mubr.msk.f32.vlgmr.msra.gmra.mrb[10].mxu0 %vm747_vm3, %v2602_v8 }
 0xd32   : > { %v3586_v10 = vpop.f32.mrb[16].mxu1 }
 0xd33   : > { %v2080_v49 = vpop.f32.mrb[17].mxu1  ;;  %v2092_v56 = vsel %vm835_vm5, %v3586_v10, -inf }
 0xd34   : > { %v2089_v20 = vsel %vm831_vm6, %v2080_v49, -inf }
 0xd3a   : > { %v3593_v50 = vpop.f32.mrb[18].mxu1 }
 0xd3b   : > { %v3614_v51 = vpop.f32.mrb[8].mxu0  ;;  %v2193_v52 = vpop.f32.mrb[19].mxu1  ;;  %v2205_v53 = vsel %vm835_vm5, %v3593_v50, -inf }
 0xd3c   : > { %v2482_v54 = vpop.f32.mrb[9].mxu0  ;;  %2206 = vmax.xlane.f32.xlu0 %v2205_v53  ;;  %v2202_v55 = vsel %vm831_vm6, %v2193_v52, -inf  ;;  %v2494_v62 = vsel %vm835_vm5, %v3614_v51, -inf }
 0xd3d   : > { %2203 = vmax.xlane.f32.xlu1 %v2202_v55  ;;  %v2491_v58 = vsel %vm831_vm6, %v2482_v54, -inf }
 0xd40   : > { %2090 = vmax.xlane.f32.xlu0 %v2089_v20 }
 0xd41   : > { %2093 = vmax.xlane.f32.xlu1 %v2092_v56 }
 0xd43   : > { %v3628_v57 = vpop.f32.mrb[10].mxu0 }
 0xd44   : > { %v2681_v61 = vpop.f32.mrb[11].mxu0  ;;  %2492 = vmax.xlane.f32.xlu0 %v2491_v58  ;;  %v2693_v1 = vsel %vm835_vm5, %v3628_v57, -inf }
 0xd45   : > { %2495 = vmax.xlane.f32.xlu1 %v2494_v62  ;;  %v2690_v0 = vsel %vm831_vm6, %v2681_v61, -inf }
 0xd48   : > { %2691 = vmax.xlane.f32.xlu0 %v2690_v0 }
 0xd49   : > { %2694 = vmax.xlane.f32.xlu1 %v2693_v1 }
 0xdc9   : > { %v2207_v2 = vpop.xlane.xlu0 %2206 }
 0xdca   : > { %v2204_v3 = vpop.xlane.xlu1 %2203  ;;  %v2209_v18 = vsub.f32 %v3593_v50, %v2207_v2 }
 0xdcb   : > { %v2208_v13 = vsub.f32 %v2193_v52, %v2204_v3 }
 0xdcc   : > { %v2212_v25 = vmul.f32 1.442695, %v2209_v18 }
 0xdcd   : > { %v2091_v4 = vpop.xlane.xlu0 %2090  ;;  %v2210_v24 = vmul.f32 1.442695, %v2208_v13 }
 0xdce   : > { %v2095_v5 = vsub.f32 %v2080_v49, %v2091_v4  ;;  %v2094_v6 = vpop.xlane.xlu1 %2093 }
 0xdcf   : > { %v2096_v12 = vsub.f32 %v3586_v10, %v2094_v6 }
 0xdd0   : > { %v2097_v17 = vmul.f32 1.442695, %v2095_v5 }
 0xdd1   : > { %v2099_v11 = vmul.f32 1.442695, %v2096_v12  ;;  %v2493_v19 = vpop.xlane.xlu0 %2492 }
 0xdd2   : > { %4040 = vpow2.f32 %v2097_v17  ;;  %v2497_v21 = vsub.f32 %v2482_v54, %v2493_v19  ;;  %v2496_v22 = vpop.xlane.xlu1 %2495 }
 0xdd3   : > { %4042 = vpow2.f32 %v2099_v11  ;;  %v2498_v23 = vsub.f32 %v3614_v51, %v2496_v22 }
 0xdd4   : > { %v2499_v41 = vmul.f32 1.442695, %v2497_v21 }
 0xdd5   : > { %v2501_v59 = vmul.f32 1.442695, %v2498_v23  ;;  %v2692_v63 = vpop.xlane.xlu0 %2691 }
 0xdd6   : > { %4044 = vpow2.f32 %v2499_v41  ;;  %v2695_v33 = vpop.xlane.xlu1 %2694  ;;  %v2696_v34 = vsub.f32 %v2681_v61, %v2692_v63 }
 0xdd7   : > { %4046 = vpow2.f32 %v2501_v59  ;;  %v2697_v15 = vsub.f32 %v3628_v57, %v2695_v33  ;;  %v3306_v59 = vld [vmem:[%s4808_s6 + $0x1] ss:$0 sm:$0xff] }
 0xdd8   : > { %4048 = vpow2.f32 %v2210_v24  ;;  %v2698_v38 = vmul.f32 1.442695, %v2696_v34 }
 0xdd9   : > { %4050 = vpow2.f32 %v2212_v25  ;;  %v2700_v32 = vmul.f32 1.442695, %v2697_v15 }
 0xddb   : > { %4052 = vpow2.f32 %v2700_v32 }
 0xddc   : > { %v4041_v16 = vpop.eup %4040  ;;  %4054 = vpow2.f32 %v2698_v38 }
 0xddd   : > { %v4629_v37 = vpop.eup %4042  ;;  %v2101_v39 = vsel %vm831_vm6, %v4041_v16, 0.0 }
 0xdde   : > { %2102 = vadd.xlane.f32.xlu0 %v2101_v39  ;;  %v2104_v40 = vsel %vm835_vm5, %v4629_v37, 0.0 }
 0xddf   : > { %2105 = vadd.xlane.f32.xlu1 %v2104_v40 }
 0xde0   : > { %v4634_v26 = vpop.eup %4044 }
 0xde1   : > { %v4636_v27 = vpop.eup %4046  ;;  %v2503_v42 = vsel %vm831_vm6, %v4634_v26, 0.0 }
 0xde2   : > { %v4049_v43 = vpop.eup %4048  ;;  %2504 = vadd.xlane.f32.xlu0 %v2503_v42  ;;  %v2506_v44 = vsel %vm835_vm5, %v4636_v27, 0.0 }
 0xde3   : > { %v4051_v9 = vpop.eup %4050  ;;  %2507 = vadd.xlane.f32.xlu1 %v2506_v44  ;;  %v2214_v45 = vsel %vm831_vm6, %v4049_v43, 0.0  ;;  %v3311_v44 = vld [vmem:[%s4811_s9 + $0x20] sm:$0xff] }
 0xde4   : > { %v2217_v47 = vsel %vm835_vm5, %v4051_v9, 0.0 }
 0xde5   : > { %v4644_v48 = vpop.eup %4052 }
 0xde6   : > { %2215 = vadd.xlane.f32.xlu0 %v2214_v45  ;;  %v2705_v7 = vsel %vm835_vm5, %v4644_v48, 0.0  ;;  %v4055_v8 = vpop.eup %4054 }
 0xde7   : > { %2218 = vadd.xlane.f32.xlu1 %v2217_v47  ;;  %v2702_v10 = vsel %vm831_vm6, %v4055_v8, 0.0  ;;  %v3313_v47 = vld [vmem:[%s4811_s9 + $0x30] sm:$0xff] }
 0xdeb   : > { %2706 = vadd.xlane.f32.xlu1 %v2705_v7 }
 0xdef   : > { %2703 = vadd.xlane.f32.xlu1 %v2702_v10 }
 0xdfc   : > { %3974 = vrot.lane.b32.xlu0 %v4576_v30, %s4835_s24 }
 0xe00   : > { %3984 = vrot.lane.b32.xlu0 %v3983_v60, %s4100_s26  ;;  %3979 = vrot.lane.b32.xlu1 %v4576_v30, %s4836_s25 }
 0xe6b   : > { %v2103_v49 = vpop.xlane.xlu0 %2102 }
 0xe6c   : > { %v2106_v50 = vpop.xlane.xlu1 %2105  ;;  %4056 = vrcp.f32 %v2103_v49 }
 0xe6f   : > { %v2505_v51 = vpop.xlane.xlu0 %2504 }
 0xe70   : > { %v2508_v52 = vpop.xlane.xlu1 %2507 }
 0xe73   : > { %v2216_v53 = vpop.xlane.xlu0 %2215 }
 0xe74   : > { %4058 = vrcp.f32 %v2216_v53  ;;  %v2219_v54 = vpop.xlane.xlu1 %2218 }
 0xe75   : > { %4060 = vrcp.f32 %v2219_v54  ;;  %v3309_v54 = vld [vmem:[%s4809_s7 + $0x1] ss:$0 sm:$0xff] }
 0xe76   : > { %4062 = vrcp.f32 %v2106_v50  ;;  %v4057_v29 = vpop.eup %4056 }
 0xe77   : > { %v3975_v55 = vpop.permute.xlu0 %3974  ;;  %4064 = vrcp.f32 %v2505_v51  ;;  %v2109_v3 = vmul.f32 %v4057_v29, %v4041_v16 }
 0xe78   : > { %v3977_v20 = vunpack.i.h.bf16 %v3975_v55  ;;  %v3976_v56 = vunpack.i.l.bf16 %v3975_v55  ;;  %v2707_v57 = vpop.xlane.xlu1 %2706  ;;  %4066 = vrcp.f32 %v2508_v52 }
 0xe7a   : > { %v3810_v58 = vpack.c.bf16 %v3977_v20, %v3976_v56  ;;  %v3310_v20 = vld [vmem:[%s4810_s8 + $0x1] ss:$0 sm:$0xff] }
 0xe7b   : > { %v3985_v4 = vpop.permute.xlu0 %3984 }
 0xe7c   : > { %v2704_v28 = vpop.xlane.xlu1 %2703  ;;  %3812 = vmatprep.subr.msk.bf16.mxu1 %vm4387_vm9, %v3810_v58  ;;  %v3987_v13 = vunpack.i.h.bf16 %v3985_v4  ;;  %v3986_v17 = vunpack.i.l.bf16 %v3985_v4  ;;  %v3324_v4 = vld [vmem:[%s4813_s11 + $0xa8] sm:$0xff] }
 0xe7d   : > { %3815 = vmatpush3.bf16.msk.msra.mxu1 %vm4387_vm9, %v3810_v58  ;;  %4068 = vrcp.f32 %v2704_v28 }
 0xe7e   : > { %v4059_v30 = vpop.eup %4058  ;;  %v3840_v19 = vpack.c.bf16 %v3987_v13, %v3986_v17  ;;  %4070 = vrcp.f32 %v2707_v57  ;;  %v3327_v17 = vld [vmem:[%s4813_s11 + $0xc0] sm:$0xff] }
 0xe7f   : > { %v4061_v60 = vpop.eup %4060  ;;  %v2222_v61 = vmul.f32 %v4059_v30, %v4049_v43 }
 0xe80   : > { %v2223_v62 = vmul.f32 %v4061_v60, %v4051_v9  ;;  %v3980_v0 = vpop.permute.xlu1 %3979  ;;  %v4063_v6 = vpop.eup %4062  ;;  %v3312_v9 = vld [vmem:[%s4811_s9 + $0x28] sm:$0xff]  ;;  %v3319_v60 = vld [vmem:[%s4813_s11 + $0x80] sm:$0xff] }
 0xe81   : > { %v3982_v1 = vunpack.i.h.bf16 %v3980_v0  ;;  %v3981_v2 = vunpack.i.l.bf16 %v3980_v0  ;;  %3598 = vmatprep.mubr.msk.f32.mxu1 %vm831_vm6, %v2222_v61  ;;  %v4065_v12 = vpop.eup %4064  ;;  %v2110_v18 = vmul.f32 %v4063_v6, %v4629_v37  ;;  %v3846_v45 = vpack.c.bf16 %v3312_v9, %v3311_v44  ;;  %v3320_v61 = vld [vmem:[%s4813_s11 + $0x88] sm:$0xff]  ;;  %v3321_v0 = vld [vmem:[%s4813_s11 + $0x90] sm:$0xff] }
 0xe82   : > { %3599 = vmatmul.mubr.msk.f32.vlgmr.msra.gmra.mrb[20].mxu1 %vm831_vm6, %v2223_v62  ;;  %v2511_v11 = vmul.f32 %v4065_v12, %v4634_v26  ;;  %v4067_v21 = vpop.eup %4066  ;;  %v3854_v62 = vpack.c.bf16 %v3320_v61, %v3319_v60  ;;  %v3325_v6 = vld [vmem:[%s4813_s11 + $0xb0] sm:$0xff]  ;;  %v3326_v12 = vld [vmem:[%s4813_s11 + $0xb8] sm:$0xff] }
 0xe83   : > { %v3816_v5 = vpack.c.bf16 %v3982_v1, %v3981_v2  ;;  %3605 = vmatprep.mubr.msk.f32.mxu1 %vm831_vm6, %v2109_v3  ;;  %v2512_v23 = vmul.f32 %v4067_v21, %v4636_v27  ;;  %v3322_v1 = vld [vmem:[%s4813_s11 + $0x98] sm:$0xff]  ;;  %v3323_v3 = vld [vmem:[%s4813_s11 + $0xa0] sm:$0xff]  ;;  %v3866_v13 = vpack.c.bf16 %v3326_v12, %v3325_v6 }
 0xe84   : > { %3855 = vmatprep.subr.bf16.mxu0 %v3854_v62  ;;  %v3858_v2 = vpack.c.bf16 %v3322_v1, %v3321_v0  ;;  %v3330_v21 = vld [vmem:[%s4813_s11 + $0xd8] sm:$0xff] }
 0xe85   : > { %3818 = vmatprep.subr.msk.bf16.mxu1 %vm4387_vm9, %v3816_v5  ;;  %3857 = vmatpush3.bf16.msra.mxu0 %v3854_v62 }
 0xe86   : > { %3821 = vmatpush3.bf16.msk.msra.mxu1 %vm4387_vm9, %v3816_v5  ;;  %3859 = vmatprep.subr.bf16.mxu0 %v3858_v2  ;;  %v3862_v5 = vpack.c.bf16 %v3324_v4, %v3323_v3 }
 0xe87   : > { %3830 = vmatprep.subr.msk.bf16.mxu1 %vm4387_vm9, %v4582_v31  ;;  %v4069_v22 = vpop.eup %4068 }
 0xe88   : > { %v2710_v24 = vmul.f32 %v4069_v22, %v4055_v8  ;;  %v4071_v41 = vpop.eup %4070 }
 0xe89   : > { %3861 = vmatpush3.bf16.msra.mxu0 %v3858_v2 }
 0xe8a   : > { %3606 = vmatmul.mubr.msk.f32.vlgmr.msra.gmra.mrb[20].mxu1 %vm831_vm6, %v2110_v18  ;;  %3863 = vmatprep.subr.bf16.mxu0 %v3862_v5  ;;  %v3328_v18 = vld [vmem:[%s4813_s11 + $0xc8] sm:$0xff] }
 0xe8b   : > { %3833 = vmatpush3.bf16.msk.msra.mxu1 %vm4387_vm9, %v4582_v31  ;;  %3619 = vmatprep.mubr.msk.f32.mxu1 %vm831_vm6, %v2511_v11  ;;  %v2711_v31 = vmul.f32 %v4071_v41, %v4644_v48  ;;  %v3314_v48 = vld [vmem:[%s4811_s9 + $0x38] sm:$0xff]  ;;  %v3870_v11 = vpack.c.bf16 %v3328_v18, %v3327_v17 }
 0xe8c   : > { %3842 = vmatprep.subr.msk.bf16.mxu1 %vm4387_vm9, %v3840_v19  ;;  %v3850_v7 = vpack.c.bf16 %v3314_v48, %v3313_v47 }
 0xe8d   : > { %3865 = vmatpush3.bf16.msra.mxu0 %v3862_v5 }
 0xe8e   : > { %3867 = vmatprep.subr.bf16.mxu0 %v3866_v13 }
 0xe91   : > { %3869 = vmatpush3.bf16.msra.mxu0 %v3866_v13 }
 0xe92   : > { %3620 = vmatmul.mubr.msk.f32.vlgmr.msra.gmra.mrb[20].mxu1 %vm831_vm6, %v2512_v23  ;;  %3871 = vmatprep.subr.bf16.mxu0 %v3870_v11  ;;  %v3331_v23 = vld [vmem:[%s4813_s11 + $0xe0] sm:$0xff] }
 0xe93   : > { %3845 = vmatpush3.bf16.msk.msra.mxu1 %vm4387_vm9, %v3840_v19  ;;  %3633 = vmatprep.mubr.msk.f32.mxu1 %vm831_vm6, %v2710_v24  ;;  %v3329_v19 = vld [vmem:[%s4813_s11 + $0xd0] sm:$0xff]  ;;  %v3332_v24 = vld [vmem:[%s4813_s11 + $0xe8] sm:$0xff] }
 0xe94   : > { %3847 = vmatprep.subr.bf16.mxu1 %v3846_v45  ;;  %v3874_v22 = vpack.c.bf16 %v3330_v21, %v3329_v19  ;;  %v3878_v41 = vpack.c.bf16 %v3332_v24, %v3331_v23  ;;  %v3336_v24 = vld [vmem:[%s4814_s12 + $0x1] ss:$0 sm:$0xff] }
 0xe95   : > { %3873 = vmatpush3.bf16.msra.mxu0 %v3870_v11 }
 0xe96   : > { %3875 = vmatprep.subr.bf16.mxu0 %v3874_v22 }
 0xe99   : > { %3877 = vmatpush3.bf16.msra.mxu0 %v3874_v22 }
 0xe9a   : > { %3634 = vmatmul.mubr.msk.f32.vlgmr.msra.gmra.mrb[20].mxu1 %vm831_vm6, %v2711_v31  ;;  %3879 = vmatprep.subr.bf16.mxu0 %v3878_v41  ;;  %v3333_v31 = vld [vmem:[%s4813_s11 + $0xf0] sm:$0xff] }
 0xe9b   : > { %3849 = vmatpush3.bf16.msra.mxu1 %v3846_v45 }
 0xe9c   : > { %3851 = vmatprep.subr.bf16.mxu1 %v3850_v7 }
 0xe9d   : > { %3881 = vmatpush3.bf16.msra.mxu0 %v3878_v41 }
 0xe9f   : > { %3853 = vmatpush3.bf16.msra.mxu1 %v3850_v7 }
 0xf6d   : > { %v3635_v25 = vpop.f32.mrb[20].mxu1 }
 0xf6e   : > { %v2804_v63 = vadd.f32 %v3635_v25, %v4519_v35  ;;  %v2792_v33 = vpop.f32.mrb[21].mxu1  ;;  %v3334_v25 = vld [vmem:[%s4813_s11 + $0xf8] sm:$0xff] }
 0xf6f   : > { %v2803_v15 = vadd.f32 %v2792_v33, %v4521_v36 }
 0xf70   : > { %v4692_v34 = vadd.f32 %v3306_v59, %v2804_v63  ;;  %v3316_v63 = vld [vmem:[%s4812_s10 + $0x1] ss:$0 sm:$0xff] }
 0xf71   : > { %v4694_v46 = vadd.f32 %v3306_v59, %v2803_v15  ;;  %v3882_v59 = vpack.c.bf16 %v3334_v25, %v3333_v31 }
 0xf72   : > { %v2822_v32 = vsel %vm597_vm2, %v4692_v34, 0.0 }
 0xf73   : > { %2823 = vadd.xlane.f32.xlu1 %v2822_v32  ;;  %v2819_v16 = vsel %vm593_vm1, %v4694_v46, 0.0  ;;  %3883 = vmatprep.subr.bf16.mxu0 %v3882_v59 }
 0xf74   : > { %2820 = vadd.xlane.f32.xlu0 %v2819_v16  ;;  %3885 = vmatpush3.bf16.msra.mxu0 %v3882_v59 }
0x1000   : > { %v2824_v37 = vpop.xlane.xlu1 %2823 }
0x1001   : > { %v2826_v38 = vmul.f32 0.03125, %v2824_v37  ;;  %v2821_v39 = vpop.xlane.xlu0 %2820 }
0x1002   : > { %v2825_v40 = vmul.f32 0.03125, %v2821_v39 }
0x1003   : > { %v2828_v35 = vsub.f32 %v4692_v34, %v2826_v38 }
0x1004   : > { %v2827_v36 = vsub.f32 %v4694_v46, %v2825_v40 }
0x1005   : > { %v2830_v42 = vmul.f32 %v2828_v35, %v2828_v35 }
0x1006   : > { %v2829_v26 = vmul.f32 %v2827_v36, %v2827_v36 }
0x1007   : > { %v2834_v43 = vsel %vm597_vm2, %v2830_v42, 0.0 }
0x1008   : > { %v2831_v27 = vsel %vm593_vm1, %v2829_v26, 0.0 }
0x1009   : > { %2832 = vadd.xlane.f32.xlu0 %v2831_v27 }
0x100d   : > { %2835 = vadd.xlane.f32.xlu0 %v2834_v43 }
0x1096   : > { %v2833_v8 = vpop.xlane.xlu0 %2832 }
0x1097   : > { %v2837_v10 = vmul.f32 0.03125, %v2833_v8 }
0x1099   : > { %v2839_v49 = vadd.f32 1e-05, %v2837_v10 }
0x109a   : > { %v2836_v50 = vpop.xlane.xlu0 %2835 }
0x109b   : > { %4072 = vrsqrt.f32 %v2839_v49  ;;  %v2838_v51 = vmul.f32 0.03125, %v2836_v50 }
0x109d   : > { %v2840_v52 = vadd.f32 1e-05, %v2838_v51 }
0x109f   : > { %4074 = vrsqrt.f32 %v2840_v52 }
0x10a5   : > { %v4073_v53 = vpop.eup %4072 }
0x10a6   : > { %v2843_v55 = vmul.f32 %v4073_v53, %v2827_v36 }
0x10a8   : > { %v2851_v56 = vmul.f32 %v3309_v54, %v2843_v55 }
0x10a9   : > { %v4075_v57 = vpop.eup %4074 }
0x10aa   : > { %v2844_v58 = vmul.f32 %v4075_v57, %v2828_v35  ;;  %v2859_v28 = vadd.f32 %v3310_v20, %v2851_v56 }
0x10ac   : > { %v2852_v29 = vmul.f32 %v3309_v54, %v2844_v58  ;;  %3644 = vmatprep.mubr.msk.f32.mxu1 %vm593_vm1, %v2859_v28 }
0x10ae   : > { %v2860_v30 = vadd.f32 %v3310_v20, %v2852_v29 }
0x10b0   : > { %3645 = vmatmul.mubr.msk.f32.vlgmr.msra.gmra.mrb[22].mxu1 %vm593_vm1, %v2860_v30 }
0x1183   : > { %v3646_v33 = vpop.f32.mrb[22].mxu1 }
0x1184   : > { %v2952_v15 = vadd.f32 %v3646_v33, %v3316_v63  ;;  %v2946_v32 = vpop.f32.mrb[23].mxu1 }
0x1185   : > { %v2947_v16 = vadd.f32 %v3316_v63, %v2946_v32 }
0x1186   : > { %v2958_v37 = vmul.f32 0.70710677, %v2952_v15  ;;  %v2956_v19 = vmul.f32 0.5, %v2952_v15 }
0x1187   : > { %v2957_v38 = vmul.f32 0.70710677, %v2947_v16  ;;  %v2955_v18 = vmul.f32 0.5, %v2947_v16 }
0x1188   : > { %v2964_v39 = vand.u32 2147483647, %v2958_v37  ;;  %vm2960_vm12 = vcmp.lt.f32.partialorder %v2958_v37, 0.0 }
0x1189   : > { %v2963_v40 = vand.u32 2147483647, %v2957_v38  ;;  %vm2959_vm13 = vcmp.lt.f32.partialorder %v2957_v38, 0.0  ;;  %v2962_v4 = vsel %vm2960_vm12, -1.0, %v4107_v14 }
0x118a   : > { %v2966_v35 = vmul.f32 0.3275911, %v2964_v39  ;;  %v2990_v42 = vsub.f32 0.0, %v2964_v39  ;;  %v2961_v12 = vsel %vm2959_vm13, -1.0, %v4107_v14 }
0x118b   : > { %v2965_v36 = vmul.f32 0.3275911, %v2963_v40  ;;  %v2989_v43 = vsub.f32 0.0, %v2963_v40 }
0x118c   : > { %v2968_v26 = vadd.f32 1.0, %v2966_v35  ;;  %v2992_v9 = vmul.f32 %v2990_v42, %v2964_v39 }
0x118d   : > { %v2967_v27 = vadd.f32 1.0, %v2965_v36  ;;  %v2991_v48 = vmul.f32 %v2989_v43, %v2963_v40 }
0x118e   : > { %4076 = vrcp.f32 %v2968_v26  ;;  %v2995_v10 = vmul.f32 1.442695, %v2992_v9 }
0x118f   : > { %4078 = vrcp.f32 %v2967_v27  ;;  %v2993_v51 = vmul.f32 1.442695, %v2991_v48 }
0x1190   : > { %4080 = vpow2.f32 %v2995_v10 }
0x1191   : > { %4082 = vpow2.f32 %v2993_v51 }
0x1198   : > { %v4077_v44 = vpop.eup %4076 }
0x1199   : > { %v4079_v45 = vpop.eup %4078  ;;  %v2972_v47 = vmul.f32 1.0614054, %v4077_v44 }
0x119a   : > { %v2971_v7 = vmul.f32 1.0614054, %v4079_v45  ;;  %v4081_v61 = vpop.eup %4080 }
0x119b   : > { %v2974_v8 = vadd.f32 -1.4531521, %v2972_v47  ;;  %v4083_v0 = vpop.eup %4082 }
0x119c   : > { %v2973_v49 = vadd.f32 -1.4531521, %v2971_v7  ;;  %v3338_v7 = vld [vmem:[%s4816_s14] ss:$0 sm:$0xff] }
0x119d   : > { %v2976_v50 = vmul.f32 %v4077_v44, %v2974_v8 }
0x119e   : > { %v2975_v52 = vmul.f32 %v4079_v45, %v2973_v49 }
0x119f   : > { %v2978_v53 = vadd.f32 1.4214138, %v2976_v50 }
0x11a0   : > { %v2977_v54 = vadd.f32 1.4214138, %v2975_v52 }
0x11a1   : > { %v2980_v55 = vmul.f32 %v4077_v44, %v2978_v53 }
0x11a2   : > { %v2979_v20 = vmul.f32 %v4079_v45, %v2977_v54 }
0x11a3   : > { %v2982_v56 = vadd.f32 -0.28449672, %v2980_v55 }
0x11a4   : > { %v2981_v57 = vadd.f32 -0.28449672, %v2979_v20 }
0x11a5   : > { %v2984_v58 = vmul.f32 %v4077_v44, %v2982_v56 }
0x11a6   : > { %v2983_v28 = vmul.f32 %v4079_v45, %v2981_v57 }
0x11a7   : > { %v2986_v29 = vadd.f32 0.2548296, %v2984_v58 }
0x11a8   : > { %v2985_v30 = vadd.f32 0.2548296, %v2983_v28 }
0x11a9   : > { %v2988_v60 = vmul.f32 %v4077_v44, %v2986_v29 }
0x11aa   : > { %v2987_v62 = vmul.f32 %v4079_v45, %v2985_v30  ;;  %v3337_v45 = vld [vmem:[%s4815_s13] ss:$0 sm:$0xff] }
0x11ab   : > { %v2998_v1 = vmul.f32 %v4081_v61, %v2988_v60 }
0x11ac   : > { %v2997_v2 = vmul.f32 %v4083_v0, %v2987_v62 }
0x11ad   : > { %v3000_v3 = vsub.f32 1.0, %v2998_v1 }
0x11ae   : > { %v2999_v5 = vsub.f32 1.0, %v2997_v2 }
0x11af   : > { %v3002_v6 = vmul.f32 %v3000_v3, %v2962_v4 }
0x11b0   : > { %v3001_v13 = vmul.f32 %v2999_v5, %v2961_v12 }
0x11b1   : > { %v3004_v17 = vadd.f32 1.0, %v3002_v6 }
0x11b2   : > { %v3003_v11 = vadd.f32 1.0, %v3001_v13 }
0x11b3   : > { %v3006_v22 = vmul.f32 %v3004_v17, %v2956_v19 }
0x11b4   : > { %v3005_v21 = vmul.f32 %v3003_v11, %v2955_v18 }
0x11b6   : > { %3679 = vmatprep.mubr.f32.mxu0 %v3005_v21 }
0x11b7   : > { %3680 = vmatmul.mubr.f32.vlgmr.msra.gmra.mrb[12].mxu0 %v3006_v22 }
0x128a   : > { %v3681_v23 = vpop.f32.mrb[12].mxu0 }
0x128b   : > { %v3100_v41 = vadd.f32 %v3681_v23, %v4692_v34  ;;  %v3090_v31 = vpop.f32.mrb[13].mxu0 }
0x128c   : > { %v3099_v25 = vadd.f32 %v3090_v31, %v4694_v46 }
0x128d   : > { %v3110_v14 = vadd.f32 %v3336_v24, %v3100_v41 }
0x128e   : > { %v3109_v59 = vadd.f32 %v3336_v24, %v3099_v25 }
0x128f   : > { %v3116_v63 = vsel %vm597_vm2, %v3110_v14, 0.0 }
0x1290   : > { %3117 = vadd.xlane.f32.xlu0 %v3116_v63  ;;  %v3113_v33 = vsel %vm593_vm1, %v3109_v59, 0.0 }
0x1291   : > { %3114 = vadd.xlane.f32.xlu1 %v3113_v33 }
0x131d   : > { %v3118_v15 = vpop.xlane.xlu0 %3117 }
0x131e   : > { %v3120_v32 = vmul.f32 0.03125, %v3118_v15  ;;  %v3115_v16 = vpop.xlane.xlu1 %3114 }
0x131f   : > { %v3119_v37 = vmul.f32 0.03125, %v3115_v16 }
0x1320   : > { %v3122_v38 = vsub.f32 %v3110_v14, %v3120_v32 }
0x1321   : > { %v3121_v39 = vsub.f32 %v3109_v59, %v3119_v37 }
0x1322   : > { %v3124_v40 = vmul.f32 %v3122_v38, %v3122_v38 }
0x1323   : > { %v3123_v35 = vmul.f32 %v3121_v39, %v3121_v39 }
0x1324   : > { %v3128_v34 = vsel %vm597_vm2, %v3124_v40, 0.0 }
0x1325   : > { %3129 = vadd.xlane.f32.xlu0 %v3128_v34  ;;  %v3125_v46 = vsel %vm593_vm1, %v3123_v35, 0.0 }
0x1326   : > { %3126 = vadd.xlane.f32.xlu1 %v3125_v46 }
0x13b2   : > { %v3130_v36 = vpop.xlane.xlu0 %3129 }
0x13b3   : > { %v3132_v26 = vmul.f32 0.03125, %v3130_v36  ;;  %v3127_v27 = vpop.xlane.xlu1 %3126 }
0x13b4   : > { %v3131_v42 = vmul.f32 0.03125, %v3127_v27 }
0x13b5   : > { %v3134_v43 = vadd.f32 1e-05, %v3132_v26 }
0x13b6   : > { %v3133_v44 = vadd.f32 1e-05, %v3131_v42 }
0x13b7   : > { %4084 = vrsqrt.f32 %v3134_v43 }
0x13b8   : > { %4086 = vrsqrt.f32 %v3133_v44 }
0x13c1   : > { %v4085_v9 = vpop.eup %4084 }
0x13c2   : > { %v4087_v47 = vpop.eup %4086  ;;  %v3138_v48 = vmul.f32 %v4085_v9, %v3122_v38 }
0x13c3   : > { %v3137_v8 = vmul.f32 %v4087_v47, %v3121_v39 }
0x13c4   : > { %v3146_v10 = vmul.f32 %v3337_v45, %v3138_v48 }
0x13c5   : > { %v3145_v49 = vmul.f32 %v3337_v45, %v3137_v8 }
0x13c6   : > { %v3154_v50 = vadd.f32 %v3338_v7, %v3146_v10 }
0x13c7   : > { %v3153_v51 = vadd.f32 %v3338_v7, %v3145_v49 }
0x13c8   : > { %3156 = vst.msk [vmem:[%s494_s17 + $0x8] sm:$0x1f] %vm597_vm2, %v3154_v50 }
0x13c9   : > { %3155 = vst.msk [vmem:[%s494_s17] sm:$0xff] %vm593_vm1, %v3153_v51 }
0x13ca PF: > { %s25_s18 = sadd.s32 1, %s4094_s18  }
0x13cb   : > { %p22_p4 = scmp.ge.s32.totalorder %s25_s18, 4  }
0x13cd   :  { %24 = sbr.rel (!%p22_p4) target bundleno = 1 (0x1), region = 121 }

</bundles_post_ra>
